<compile_context>
chip_gen: v7x
topology: tpu7x:2x2x1
jax: 0.10.0
libtpu: 0.0.40
codegen_flags: <defaults>
</compile_context>

<pallas_src>
import functools
import math

import jax
import jax.numpy as jnp
from jax.experimental import pallas as pl
from jax.experimental.pallas import tpu as pltpu


# MXU on v6e/v7x is 256x256; 256-alignment is also legal on v5e's 128x128 MXU
# (it only wastes a little when H is an odd multiple of 128).
_LANE_PAD = 256


def _round_up(x, m):
    return (x + m - 1) // m * m


def _gelu_exact(x):
    # PyTorch nn.GELU() default (erf-based, not tanh approximation).
    # If VALU ever binds (small H), switch to tanh-GELU (EUP) -- changes numerics.
    return 0.5 * x * (1.0 + jax.lax.erf(x * (1.0 / math.sqrt(2.0))))


@functools.lru_cache(maxsize=None)
def _vmem_capacity_bytes():
    """Physical VMEM per TensorCore (64 MiB on v7x, 128 MiB on v5e/v6e)."""
    try:
        return int(pltpu.get_tpu_info().vmem_capacity_bytes)
    except Exception:
        return 64 * 1024 * 1024          # conservative (v7x-sized) fallback


def _choose_token_tile(n_tokens, hp, vmem_bytes):
    """Pick TM per generation: big tiles on 128 MiB parts, smaller on v7x,
    minimal token padding, and >=2 grid steps when possible (megacore)."""
    if vmem_bytes >= (96 << 20):                  # v5e / v6e (128 MiB VMEM)
        cap = 1024 if hp <= 1536 else 512
    else:                                         # v7x (64 MiB VMEM / TC)
        cap = 512 if hp < 2048 else 256
    # Ensure at least 2 grid steps when there are enough tokens so
    # dimension_semantics=("parallel",) can shard across v7x's 2 TensorCores.
    cap = min(cap, max(128, _round_up((n_tokens + 1) // 2, 128)))

    best_tm, best_waste = 128, None
    for tm in (128, 256, 512, 1024):
        if tm > cap:
            break
        waste = _round_up(n_tokens, tm) - n_tokens
        if best_waste is None or waste < best_waste or (
                waste == best_waste and tm > best_tm):
            best_tm, best_waste = tm, waste
    return best_tm


def _reward_kernel(
    x_ref,                      # (TM, Hp)  token tile, bf16, zero-padded
    w_enc_ref, b_enc_ref,       # (Hp, Hp) bf16, (1, Hp) f32
    w_feat_ref, b_feat_ref,     # (Hp, Fp) bf16, (1, Fp) f32  [fused corr/clar/eff]
    w_r1_ref, b_r1_ref,         # (Fp, Hp) bf16, (1, Hp) f32
    w_r2_ref,                   # (1, Hp)  f32 row for the VPU reduce
    b_r2_ref,                   # (1, 1)   f32 scalar in SMEM
    out_ref,                    # (TM, 128) per-token reward broadcast over lanes
):
    x = x_ref[...]              # already bf16 -- streamed at half the HBM bytes

    # encoder: Linear(H->H) + GELU (+ Dropout == identity in eval).
    # Epilogue (bias add / GELU) stays f32: v5e VPU/EUP have no bf16 path and
    # it keeps parity with PyTorch's erf GELU.
    enc = _gelu_exact(
        jnp.dot(x, w_enc_ref[...], preferred_element_type=jnp.float32)
        + b_enc_ref[...]
    )

    # fused correctness/clarity/efficiency projections: (TM,Hp) @ (Hp,Fp)
    comb = (
        jnp.dot(enc.astype(jnp.bfloat16), w_feat_ref[...],
                preferred_element_type=jnp.float32)
        + b_feat_ref[...]
    )

    # reward head linear 1 (the torch concat is folded into w_feat/w_r1 layout)
    h = _gelu_exact(
        jnp.dot(comb.astype(jnp.bfloat16), w_r1_ref[...],
                preferred_element_type=jnp.float32)
        + b_r1_ref[...]
    )

    # reward head linear 2: width-1 output -> VPU multiply + lane reduction
    # (keeps the MXU off a 1-wide matmul); scalar bias read from SMEM.
    r = jnp.sum(h * w_r2_ref[...], axis=-1, keepdims=True) + b_r2_ref[0, 0]

    # lane-dense (128-wide, unmasked) store; host consumes column 0.
    out_ref[...] = jnp.broadcast_to(r, out_ref.shape).astype(out_ref.dtype)


def init_params(key, hidden_size):
    """Deterministic synthetic parameters (shapes match MathRewardModel.__init__),
    stored in x @ W + b layout (transpose of torch.nn.Linear.weight)."""
    H = hidden_size
    Hc = H // 2
    ks = jax.random.split(key, 6)

    def lin(kw, fan_in, fan_out):
        bound = 1.0 / math.sqrt(fan_in)
        w = jax.random.uniform(kw, (fan_in, fan_out), jnp.float32, -bound, bound)
        b = jnp.zeros((1, fan_out), jnp.float32)
        return w, b

    w_enc, b_enc = lin(ks[0], H, H)
    w_cor, b_cor = lin(ks[1], H, Hc)
    w_clr, b_clr = lin(ks[2], H, Hc)
    w_eff, b_eff = lin(ks[3], H, Hc)
    w_r1, b_r1 = lin(ks[4], 3 * Hc, H)
    w_r2, b_r2 = lin(ks[5], H, 1)

    # give biases nonzero deterministic values
    b_enc = b_enc + 0.01
    b_cor = b_cor + 0.02
    b_clr = b_clr - 0.02
    b_eff = b_eff + 0.03
    b_r1 = b_r1 - 0.01
    b_r2 = b_r2 + 0.05

    return dict(
        w_enc=w_enc, b_enc=b_enc,
        w_cor=w_cor, b_cor=b_cor,
        w_clr=w_clr, b_clr=b_clr,
        w_eff=w_eff, b_eff=b_eff,
        w_r1=w_r1, b_r1=b_r1,
        w_r2=w_r2, b_r2=b_r2,
    )


def prepare_kernel_params(params, hidden_size):
    """Fuse the three feature projections, pad hidden dims to multiples of 256
    (full MXU passes on v6e/v7x), and cast matmul weights to bf16 (biases and
    the w_r2 reduction row stay f32)."""
    H = hidden_size
    Hc = H // 2
    F = 3 * Hc
    Hp = _round_up(H, _LANE_PAD)
    Fp = _round_up(F, _LANE_PAD)

    def pad2(a, rows, cols):
        return jnp.pad(a, ((0, rows - a.shape[0]), (0, cols - a.shape[1])))

    w_feat = jnp.concatenate([params["w_cor"], params["w_clr"], params["w_eff"]], axis=1)
    b_feat = jnp.concatenate([params["b_cor"], params["b_clr"], params["b_eff"]], axis=1)

    return dict(
        w_enc=pad2(params["w_enc"], Hp, Hp).astype(jnp.bfloat16),
        b_enc=pad2(params["b_enc"], 1, Hp),
        w_feat=pad2(w_feat, Hp, Fp).astype(jnp.bfloat16),
        b_feat=pad2(b_feat, 1, Fp),
        w_r1=pad2(params["w_r1"], Fp, Hp).astype(jnp.bfloat16),
        b_r1=pad2(params["b_r1"], 1, Hp),
        w_r2=pad2(params["w_r2"].T, 1, Hp),        # (1, Hp) f32 row for the VPU reduce
        b_r2=params["b_r2"].reshape(1, 1),         # scalar -> SMEM
    )


@functools.partial(
    jax.jit,
    static_argnames=("has_reasoning_steps", "has_solution", "has_ground_truth",
                     "use_symbolic_verification", "use_numerical_verification"),
)
def math_reward_forward(
    hidden_states,               # (B, S, H)
    kparams,                     # prepared (padded / fused / bf16) params
    has_reasoning_steps=False,
    has_solution=False,
    has_ground_truth=False,
    use_symbolic_verification=True,
    use_numerical_verification=True,
):
    B, S, H = hidden_states.shape
    N = B * S
    Hp = kparams["w_enc"].shape[0]
    Fp = kparams["w_feat"].shape[1]

    vmem_cap = _vmem_capacity_bytes()
    vmem_limit = max(32 << 20, int(vmem_cap * 0.85))   # leave headroom for
                                                       # compiler scratch / intermediates
    TM = _choose_token_tile(N, Hp, vmem_cap)
    N_pad = _round_up(N, TM)

    # Stream activations in bf16: halves the only per-step HBM->VMEM DMA.
    x = hidden_states.reshape(N, H).astype(jnp.bfloat16)
    x = jnp.pad(x, ((0, N_pad - N), (0, Hp - H)))

    ordered = [
        x,
        kparams["w_enc"], kparams["b_enc"],
        kparams["w_feat"], kparams["b_feat"],
        kparams["w_r1"], kparams["b_r1"],
        kparams["w_r2"], kparams["b_r2"],
    ]
    # Grid-invariant operands: single-buffered (no point double-buffering a
    # block whose index never changes; halves resident-weight VMEM).
    single = dict(pipeline_mode=pl.Buffered(buffer_count=1))
    in_specs = [
        pl.BlockSpec((TM, Hp), lambda i: (i, 0)),               # x: tiled over tokens
        pl.BlockSpec((Hp, Hp), lambda i: (0, 0), **single),     # weights/biases resident
        pl.BlockSpec((1, Hp), lambda i: (0, 0), **single),
        pl.BlockSpec((Hp, Fp), lambda i: (0, 0), **single),
        pl.BlockSpec((1, Fp), lambda i: (0, 0), **single),
        pl.BlockSpec((Fp, Hp), lambda i: (0, 0), **single),
        pl.BlockSpec((1, Hp), lambda i: (0, 0), **single),
        pl.BlockSpec((1, Hp), lambda i: (0, 0), **single),
        pl.BlockSpec(memory_space=pltpu.MemorySpace.SMEM),      # b_r2 scalar in SMEM
    ]

    flops = 2 * N_pad * (Hp * Hp + Hp * Fp + Fp * Hp + Hp)
    transcendentals = 2 * N_pad * Hp                          # two erf-GELU layers
    bytes_accessed = (N_pad * Hp * 2                          # bf16 activations in
                      + N_pad * 128 * 4                       # f32 broadcast reward out
                      + 2 * (Hp * Hp + Hp * Fp + Fp * Hp)     # bf16 weights (read once)
                      + 4 * (3 * Hp + Fp + 1))                # f32 biases + w_r2 row

    out = pl.pallas_call(
        _reward_kernel,
        out_shape=jax.ShapeDtypeStruct((N_pad, 128), jnp.float32),
        grid_spec=pltpu.PrefetchScalarGridSpec(
            num_scalar_prefetch=0,
            grid=(N_pad // TM,),
            in_specs=in_specs,
            out_specs=pl.BlockSpec((TM, 128), lambda i: (i, 0)),
        ),
        compiler_params=pltpu.CompilerParams(
            dimension_semantics=("parallel",),
            vmem_limit_bytes=vmem_limit,
        ),
        cost_estimate=pl.CostEstimate(
            flops=flops,
            transcendentals=transcendentals,
            bytes_accessed=bytes_accessed,
        ),
    )(*ordered)

    reward = out[:N, 0].reshape(B, S)            # == reward_head(...).squeeze(-1)
    base_reward = reward.mean(axis=1)            # (B,)

    sym_val = 0.5 if (use_symbolic_verification and has_reasoning_steps) else 0.0
    num_val = 0.5 if (use_numerical_verification and has_solution and has_ground_truth) else 0.0
    symbolic_score = jnp.full((B,), sym_val, jnp.float32)
    numerical_score = jnp.full((B,), num_val, jnp.float32)

    final_reward = base_reward + symbolic_score + numerical_score
    return {
        "reward": final_reward,
        "base_reward": base_reward,
        "symbolic_score": symbolic_score,
        "numerical_score": numerical_score,
    }


def _reference_forward(hidden_states, params):
    """Pure-JAX f32 reference of the same math (for a sanity check)."""
    B, S, H = hidden_states.shape
    x = hidden_states.reshape(B * S, H)
    enc = _gelu_exact(x @ params["w_enc"] + params["b_enc"])
    corr = enc @ params["w_cor"] + params["b_cor"]
    clar = enc @ params["w_clr"] + params["b_clr"]
    eff = enc @ params["w_eff"] + params["b_eff"]
    comb = jnp.concatenate([corr, clar, eff], axis=-1)
    h = _gelu_exact(comb @ params["w_r1"] + params["b_r1"])
    r = (h @ params["w_r2"] + params["b_r2"]).reshape(B, S)
    return r.mean(axis=1)


if __name__ == "__main__":
    key = jax.random.PRNGKey(0)
    k_x, k_p = jax.random.split(key)

    B, S, H = 2, 8, 32
    hidden_states = jax.random.normal(k_x, (B, S, H), jnp.float32)
    params = init_params(k_p, H)
    kparams = prepare_kernel_params(params, H)

    out = math_reward_forward(
        hidden_states,
        kparams,
        has_reasoning_steps=True,   # -> symbolic_score = 0.5
        has_solution=True,          # -> numerical_score = 0.5 (with ground truth)
        has_ground_truth=True,
    )
    jax.block_until_ready(out)

    # sanity check against pure-JAX f32 reference (bf16 activations/weights in
    # the kernel -> relaxed tolerance; accumulation stays f32).
    ref_base = _reference_forward(hidden_states, params)
    assert jnp.allclose(out["base_reward"], ref_base, atol=3e-2, rtol=3e-2), (
        out["base_reward"], ref_base)
    assert jnp.allclose(out["reward"], ref_base + 1.0, atol=3e-2, rtol=3e-2)

    print("KERNEL_OK")
</pallas_src>

<mosaic_0001>
module attributes {stable_mosaic.version = 11 : i64} {
  func.func @_reward_kernel(%arg0: i32, %arg1: memref<128x256xbf16, #tpu.memory_space<vmem>>, %arg2: memref<256x256xbf16, #tpu.memory_space<vmem>>, %arg3: memref<1x256xf32, #tpu.memory_space<vmem>>, %arg4: memref<256x256xbf16, #tpu.memory_space<vmem>>, %arg5: memref<1x256xf32, #tpu.memory_space<vmem>>, %arg6: memref<256x256xbf16, #tpu.memory_space<vmem>>, %arg7: memref<1x256xf32, #tpu.memory_space<vmem>>, %arg8: memref<1x256xf32, #tpu.memory_space<vmem>>, %arg9: memref<1x1xf32, #tpu.memory_space<smem>>, %arg10: memref<128x128xf32, #tpu.memory_space<vmem>>) attributes {dimension_semantics = [#tpu.dimension_semantics<parallel>], iteration_bounds = array<i64: 1>, scalar_prefetch = 0 : i64, scratch_operands = 0 : i64, tpu.core_type = #tpu.core_type<tc>, window_params = [{transform_indices = @transform_0, window_bounds = array<i64: 128, 256>}, {pipeline_mode = #tpu.pipeline_mode<synchronous>, transform_indices = @transform_1, window_bounds = array<i64: 256, 256>}, {pipeline_mode = #tpu.pipeline_mode<synchronous>, transform_indices = @transform_2, window_bounds = array<i64: 1, 256>}, {pipeline_mode = #tpu.pipeline_mode<synchronous>, transform_indices = @transform_3, window_bounds = array<i64: 256, 256>}, {pipeline_mode = #tpu.pipeline_mode<synchronous>, transform_indices = @transform_4, window_bounds = array<i64: 1, 256>}, {pipeline_mode = #tpu.pipeline_mode<synchronous>, transform_indices = @transform_5, window_bounds = array<i64: 256, 256>}, {pipeline_mode = #tpu.pipeline_mode<synchronous>, transform_indices = @transform_6, window_bounds = array<i64: 1, 256>}, {pipeline_mode = #tpu.pipeline_mode<synchronous>, transform_indices = @transform_7, window_bounds = array<i64: 1, 256>}, {transform_indices = @transform_8, window_bounds = array<i64: 1, 1>}, {transform_indices = @transform_9, window_bounds = array<i64: 128, 128>}]} {
    %c0 = arith.constant 0 : index
    %c0_0 = arith.constant 0 : index
    %0 = vector.load %arg1[%c0, %c0_0] : memref<128x256xbf16, #tpu.memory_space<vmem>>, vector<128x256xbf16>
    %c0_1 = arith.constant 0 : index
    %c0_2 = arith.constant 0 : index
    %1 = vector.load %arg2[%c0_1, %c0_2] : memref<256x256xbf16, #tpu.memory_space<vmem>>, vector<256x256xbf16>
    %cst = arith.constant dense<0.000000e+00> : vector<128x256xf32>
    %2 = tpu.matmul %0, %1, %cst {dimension_numbers = #tpu.dot_dimension_numbers<[1], [0], [0], [1], [0, 0, 1, 1], [], []>} : vector<128x256xbf16>, vector<256x256xbf16>, vector<128x256xf32> -> vector<128x256xf32>
    %c0_3 = arith.constant 0 : index
    %c0_4 = arith.constant 0 : index
    %3 = vector.load %arg3[%c0_3, %c0_4] : memref<1x256xf32, #tpu.memory_space<vmem>>, vector<1x256xf32>
    %4 = vector.broadcast %3 : vector<1x256xf32> to vector<128x256xf32>
    %5 = arith.addf %2, %4 : vector<128x256xf32>
    %cst_5 = arith.constant 5.000000e-01 : f32
    %6 = vector.broadcast %cst_5 : f32 to vector<128x256xf32>
    %7 = arith.mulf %6, %5 : vector<128x256xf32>
    %cst_6 = arith.constant 0.707106769 : f32
    %8 = vector.broadcast %cst_6 : f32 to vector<128x256xf32>
    %9 = arith.mulf %5, %8 : vector<128x256xf32>
    %10 = math.erf %9 : vector<128x256xf32>
    %cst_7 = arith.constant 1.000000e+00 : f32
    %11 = vector.broadcast %cst_7 : f32 to vector<128x256xf32>
    %12 = arith.addf %11, %10 : vector<128x256xf32>
    %13 = arith.mulf %7, %12 : vector<128x256xf32>
    %14 = arith.truncf %13 : vector<128x256xf32> to vector<128x256xbf16>
    %c0_8 = arith.constant 0 : index
    %c0_9 = arith.constant 0 : index
    %15 = vector.load %arg4[%c0_8, %c0_9] : memref<256x256xbf16, #tpu.memory_space<vmem>>, vector<256x256xbf16>
    %cst_10 = arith.constant dense<0.000000e+00> : vector<128x256xf32>
    %16 = tpu.matmul %14, %15, %cst_10 {dimension_numbers = #tpu.dot_dimension_numbers<[1], [0], [0], [1], [0, 0, 1, 1], [], []>} : vector<128x256xbf16>, vector<256x256xbf16>, vector<128x256xf32> -> vector<128x256xf32>
    %c0_11 = arith.constant 0 : index
    %c0_12 = arith.constant 0 : index
    %17 = vector.load %arg5[%c0_11, %c0_12] : memref<1x256xf32, #tpu.memory_space<vmem>>, vector<1x256xf32>
    %18 = vector.broadcast %17 : vector<1x256xf32> to vector<128x256xf32>
    %19 = arith.addf %16, %18 : vector<128x256xf32>
    %20 = arith.truncf %19 : vector<128x256xf32> to vector<128x256xbf16>
    %c0_13 = arith.constant 0 : index
    %c0_14 = arith.constant 0 : index
    %21 = vector.load %arg6[%c0_13, %c0_14] : memref<256x256xbf16, #tpu.memory_space<vmem>>, vector<256x256xbf16>
    %cst_15 = arith.constant dense<0.000000e+00> : vector<128x256xf32>
    %22 = tpu.matmul %20, %21, %cst_15 {dimension_numbers = #tpu.dot_dimension_numbers<[1], [0], [0], [1], [0, 0, 1, 1], [], []>} : vector<128x256xbf16>, vector<256x256xbf16>, vector<128x256xf32> -> vector<128x256xf32>
    %c0_16 = arith.constant 0 : index
    %c0_17 = arith.constant 0 : index
    %23 = vector.load %arg7[%c0_16, %c0_17] : memref<1x256xf32, #tpu.memory_space<vmem>>, vector<1x256xf32>
    %24 = vector.broadcast %23 : vector<1x256xf32> to vector<128x256xf32>
    %25 = arith.addf %22, %24 : vector<128x256xf32>
    %cst_18 = arith.constant 5.000000e-01 : f32
    %26 = vector.broadcast %cst_18 : f32 to vector<128x256xf32>
    %27 = arith.mulf %26, %25 : vector<128x256xf32>
    %cst_19 = arith.constant 0.707106769 : f32
    %28 = vector.broadcast %cst_19 : f32 to vector<128x256xf32>
    %29 = arith.mulf %25, %28 : vector<128x256xf32>
    %30 = math.erf %29 : vector<128x256xf32>
    %cst_20 = arith.constant 1.000000e+00 : f32
    %31 = vector.broadcast %cst_20 : f32 to vector<128x256xf32>
    %32 = arith.addf %31, %30 : vector<128x256xf32>
    %33 = arith.mulf %27, %32 : vector<128x256xf32>
    %c0_21 = arith.constant 0 : index
    %c0_22 = arith.constant 0 : index
    %34 = vector.load %arg8[%c0_21, %c0_22] : memref<1x256xf32, #tpu.memory_space<vmem>>, vector<1x256xf32>
    %35 = vector.broadcast %34 : vector<1x256xf32> to vector<128x256xf32>
    %36 = arith.mulf %33, %35 : vector<128x256xf32>
    %cst_23 = arith.constant dense<0.000000e+00> : vector<128xf32>
    %37 = vector.multi_reduction <add>, %36, %cst_23 [1] : vector<128x256xf32> to vector<128xf32>
    %38 = vector.shape_cast %37 : vector<128xf32> to vector<128x1xf32>
    %c0_24 = arith.constant 0 : index
    %c0_25 = arith.constant 0 : index
    %39 = memref.load %arg9[%c0_24, %c0_25] : memref<1x1xf32, #tpu.memory_space<smem>>
    %40 = vector.broadcast %39 : f32 to vector<128x1xf32>
    %41 = arith.addf %38, %40 : vector<128x1xf32>
    %42 = vector.shape_cast %41 : vector<128x1xf32> to vector<128x1xf32>
    %43 = vector.broadcast %42 : vector<128x1xf32> to vector<128x128xf32>
    %c0_26 = arith.constant 0 : index
    %c0_27 = arith.constant 0 : index
    %44 = vector.load %arg10[%c0_26, %c0_27] : memref<128x128xf32, #tpu.memory_space<vmem>>, vector<128x128xf32>
    tpu.vector_store %arg10[%c0_26, %c0_27], %43 {strides = array<i32>} : memref<128x128xf32, #tpu.memory_space<vmem>>, vector<128x128xf32>,
    return
  }
  func.func @transform_0(%arg0: i32) -> (i32, i32) {
    %c0_i32 = arith.constant 0 : i32
    %c0_i32_0 = arith.constant 0 : i32
    return %arg0, %c0_i32 : i32, i32
  }
  func.func @transform_1(%arg0: i32) -> (i32, i32) {
    %c0_i32 = arith.constant 0 : i32
    %c0_i32_0 = arith.constant 0 : i32
    %c0_i32_1 = arith.constant 0 : i32
    return %c0_i32, %c0_i32_0 : i32, i32
  }
  func.func @transform_2(%arg0: i32) -> (i32, i32) {
    %c0_i32 = arith.constant 0 : i32
    %c0_i32_0 = arith.constant 0 : i32
    %c0_i32_1 = arith.constant 0 : i32
    return %c0_i32, %c0_i32_0 : i32, i32
  }
  func.func @transform_3(%arg0: i32) -> (i32, i32) {
    %c0_i32 = arith.constant 0 : i32
    %c0_i32_0 = arith.constant 0 : i32
    %c0_i32_1 = arith.constant 0 : i32
    return %c0_i32, %c0_i32_0 : i32, i32
  }
  func.func @transform_4(%arg0: i32) -> (i32, i32) {
    %c0_i32 = arith.constant 0 : i32
    %c0_i32_0 = arith.constant 0 : i32
    %c0_i32_1 = arith.constant 0 : i32
    return %c0_i32, %c0_i32_0 : i32, i32
  }
  func.func @transform_5(%arg0: i32) -> (i32, i32) {
    %c0_i32 = arith.constant 0 : i32
    %c0_i32_0 = arith.constant 0 : i32
    %c0_i32_1 = arith.constant 0 : i32
    return %c0_i32, %c0_i32_0 : i32, i32
  }
  func.func @transform_6(%arg0: i32) -> (i32, i32) {
    %c0_i32 = arith.constant 0 : i32
    %c0_i32_0 = arith.constant 0 : i32
    %c0_i32_1 = arith.constant 0 : i32
    return %c0_i32, %c0_i32_0 : i32, i32
  }
  func.func @transform_7(%arg0: i32) -> (i32, i32) {
    %c0_i32 = arith.constant 0 : i32
    %c0_i32_0 = arith.constant 0 : i32
    %c0_i32_1 = arith.constant 0 : i32
    return %c0_i32, %c0_i32_0 : i32, i32
  }
  func.func @transform_8(%arg0: i32) -> (i32, i32) {
    %c0_i32 = arith.constant 0 : i32
    %c0_i32_0 = arith.constant 0 : i32
    %c0_i32_1 = arith.constant 0 : i32
    return %c0_i32, %c0_i32_0 : i32, i32
  }
  func.func @transform_9(%arg0: i32) -> (i32, i32) {
    %c0_i32 = arith.constant 0 : i32
    %c0_i32_0 = arith.constant 0 : i32
    return %arg0, %c0_i32 : i32, i32
  }
}

</mosaic_0001>

<bundles_post_ra>
// kernel: squeeze.1
= control target key start
LH: loop header
LB: loop body
LE: loop exit
PB: predicated region body
PF: predicated region fallthrough
CT: control target
= control target key end

     0   :  { %vm7_vm0 = vcmask 64512   ;;  %s39_s0 = inlined_call_operand.vmem [shape: f32[16], index: 0, kind: input, shape index: {}]   ;;  %s40_s1 = inlined_call_operand.vmem [shape: f32[2,8], index: 1, kind: output, shape index: {}]  }
   0x1   :  { %v4_v0 = vld [vmem:[%s39_s0] sm:$0x1]  ;;  %s22_s0 = smov 120  }
   0x2   :  { %5 = vst [vmem:[#allocation1] sm:$0x1] %v4_v0 }
   0x9   :  { %v9_v1 = vld [vmem:[#allocation1] sm:$0x1]  }
   0xa   :  { %v6_v2 = vld [vmem:[#allocation1] sm:$0x1]   ;;  %10 = vrot.lane.b32.xlu0 %v9_v1, %s22_s0 }
   0xb   :  { %8 = vst.msk [vmem:[#allocation0] sm:$0x1] %vm7_vm0, %v6_v2  }
  0x7c   :  { %v11_v3 = vpop.permute.xlu0 %10  }
  0x7d   :  { %14 = vst.msk [vmem:[#allocation0 + $0x1] sm:$0x1] %vm7_vm0, %v11_v3  }
  0x84   :  { %v18_v4 = vld [vmem:[#allocation0] sm:$0x3] }
  0x85   :  { %20 = vst [vmem:[%s40_s1] sm:$0x3] %v18_v4 }

// kernel: math_reward_forward.1
= control target key start
LH: loop header
LB: loop body
LE: loop exit
PB: predicated region body
PF: predicated region fallthrough
CT: control target
= control target key end

     0   :  { %15 = vsyncpa [#allocation4], 0  ;;  %s2770_s0 = inlined_call_operand.vmem [shape: bf16[128,256], index: 0, kind: input, shape index: {}]   ;;  %s2771_s1 = inlined_call_operand.hbm [shape: bf16[256,256], index: 1, kind: input, shape index: {}]   ;;  %s2772_s2 = inlined_call_operand.vmem [shape: f32[1,256], index: 2, kind: input, shape index: {}]   ;;  %s2773_s3 = inlined_call_operand.hbm [shape: bf16[256,256], index: 3, kind: input, shape index: {}]   ;;  %s2774_s4 = inlined_call_operand.vmem [shape: f32[1,256], index: 4, kind: input, shape index: {}]   ;;  %s2775_s5 = inlined_call_operand.hbm [shape: bf16[256,256], index: 5, kind: input, shape index: {}]   ;;  %s2776_s6 = inlined_call_operand.vmem [shape: f32[1,256], index: 6, kind: input, shape index: {}]   ;;  %s2777_s7 = inlined_call_operand.vmem [shape: f32[1,256], index: 7, kind: input, shape index: {}]   ;;  %s2778_s8 = inlined_call_operand.<no memory space> [shape: f32[1,1], index: 8, kind: input, shape index: {}]   ;;  %s2779_s9 = inlined_call_operand.vmem [shape: f32[128,128], index: 9, kind: output, shape index: {}]  }
   0x1   :  { %16 = vsyncpa [#allocation6], 0  ;;  %s2120_s30 = smov [#allocation5]   ;;  %s2121_s11 = smov [#allocation3]  }
   0x2   :  { %s38_s10 = sshll.u32 %s2120_s30, 4  ;;  %s24_s12 = sshll.u32 %s2121_s11, 4  ;;  %s39_s10 = int_to_ptr.vmem [resolvable:$true] %s38_s10  ;;  %s2175_s12 = int_to_ptr.vmem [resolvable:$true] %s24_s12 }
   0x3   :  { %s2050_s15 = scalar_lea.hbm %s2773_s3, 4096 }
   0x4   :  { %p2051_p0 = scmp.ne.s32.totalorder %s2773_s3, %s2050_s15  ;;  %p2054_p1 = scmp.lt.u32.totalorder %s2050_s15, %s2773_s3 }
   0x6   :  { %p2056_p2 = pnand %p2054_p1, %p2051_p0 }
   0x8   :  { %2059 = shalt.err (!%p2056_p2)
}
   0x9   :  { %s2060_s20 = scalar_lea.vmem %s39_s10, 4096  ;;  %p2065_p4 = scmp.lt.s32.totalorder %s39_s10, %s39_s10 }
   0xa   :  { %p2061_p3 = scmp.ne.s32.totalorder %s39_s10, %s2060_s20  ;;  %p2066_p5 = scmp.lt.s32.totalorder %s2060_s20, %s2060_s20 }
   0xc   :  { %p2067_p6 = por %p2066_p5, %p2065_p4 }
   0xe   :  { %p2068_p7 = pnand %p2067_p6, %p2061_p3 }
  0x10   :  { %2071 = shalt.err (!%p2068_p7)
}
  0x11   :  { %s2122_s21 = smov 128   ;;  %s2123_s22 = smov 8  }
  0x12   :  { %44 = dma.hbm_to_vmem [thread:$0]  %s2773_s3, 4096, %s39_s10, [#allocation6], %s2122_s21, %s2122_s21, %s2123_s22  }
  0x13   :  { %s2072_s27 = scalar_lea.hbm %s2771_s1, 4096 }
  0x14   :  { %p2073_p8 = scmp.ne.s32.totalorder %s2771_s1, %s2072_s27  ;;  %p2076_p9 = scmp.lt.u32.totalorder %s2072_s27, %s2771_s1 }
  0x16   :  { %p2078_p10 = pnand %p2076_p9, %p2073_p8 }
  0x18   :  { %2081 = shalt.err (!%p2078_p10)
}
  0x19   :  { %s2082_s13 = scalar_lea.vmem %s2175_s12, 4096  ;;  %p2087_p12 = scmp.lt.s32.totalorder %s2175_s12, %s2175_s12 }
  0x1a   :  { %p2083_p11 = scmp.ne.s32.totalorder %s2175_s12, %s2082_s13  ;;  %p2088_p13 = scmp.lt.s32.totalorder %s2082_s13, %s2082_s13 }
  0x1c   :  { %p2089_p0 = por %p2088_p13, %p2087_p12 }
  0x1e   :  { %p2090_p1 = pnand %p2089_p0, %p2083_p11 }
  0x20   :  { %2093 = shalt.err (!%p2090_p1)
}
  0x21   :  { %30 = dma.hbm_to_vmem [thread:$0]  %s2771_s1, 4096, %s2175_s12, [#allocation4], %s2122_s21, %s2122_s21, %s2123_s22  }
  0x22   :  { %s2124_s14 = smov [#allocation7]   ;;  %s2094_s18 = scalar_lea.hbm %s2775_s5, 4096 }
  0x23   :  { %s52_s15 = sshll.u32 %s2124_s14, 4  ;;  %p2095_p2 = scmp.ne.s32.totalorder %s2775_s5, %s2094_s18  ;;  %s53_s15 = int_to_ptr.vmem [resolvable:$true] %s52_s15 }
  0x24   :  { %p2098_p3 = scmp.lt.u32.totalorder %s2094_s18, %s2775_s5 }
  0x26   :  { %p2100_p4 = pnand %p2098_p3, %p2095_p2 }
  0x28   :  { %2103 = shalt.err (!%p2100_p4)
}
  0x29   :  { %s2104_s25 = scalar_lea.vmem %s53_s15, 4096  ;;  %p2109_p6 = scmp.lt.s32.totalorder %s53_s15, %s53_s15 }
  0x2a   :  { %p2105_p5 = scmp.ne.s32.totalorder %s53_s15, %s2104_s25  ;;  %p2110_p7 = scmp.lt.s32.totalorder %s2104_s25, %s2104_s25 }
  0x2c   :  { %p2111_p8 = por %p2110_p7, %p2109_p6 }
  0x2e   :  { %p2112_p9 = pnand %p2111_p8, %p2105_p5 }
  0x30   :  { %2115 = shalt.err (!%p2112_p9)
}
  0x31   :  { %58 = dma.hbm_to_vmem [thread:$0]  %s2775_s5, 4096, %s53_s15, [#allocation6], %s2122_s21, %s2122_s21, %s2123_s22  }
  0x32   :  { %2116 = dma.done.wait [#allocation4], 4096  }
  0x33   :  { %2117 = vsyncadd [#allocation4], 4294963200 }
  0x34   :  { %2118 = dma.done.wait [#allocation6], 8192  }
  0x35   :  { %2119 = vsyncadd [#allocation6], 4294959104  ;;  %v1754_v0 = vld [vmem:[#allocation3 + $0x4] ss:$8 sps:$4 sm:$0xff]   ;;  %v1756_v1 = vld [vmem:[#allocation3] ss:$8 sps:$4 sm:$0xff]  }
  0x36   :  { %374 = vmatprep.subr.bf16.mxu0 %v1754_v0  ;;  %v1757_v2 = vld [vmem:[#allocation3 + $0x14] ss:$8 sps:$4 sm:$0xff]   ;;  %v1759_v3 = vld [vmem:[#allocation3 + $0x10] ss:$8 sps:$4 sm:$0xff]   ;;  %v1760_v4 = vld [vmem:[#allocation3 + $0x24] ss:$8 sps:$4 sm:$0xff]  }
  0x37   :  { %375 = vmatpush1.bf16.msra.mxu0 %v1756_v1  ;;  %v1762_v5 = vld [vmem:[#allocation3 + $0x20] ss:$8 sps:$4 sm:$0xff]   ;;  %v1763_v6 = vld [vmem:[#allocation3 + $0x34] ss:$8 sps:$4 sm:$0xff]   ;;  %v1765_v7 = vld [vmem:[#allocation3 + $0x30] ss:$8 sps:$4 sm:$0xff]  }
  0x38   :  { %376 = vmatprep.subr.bf16.mxu0 %v1757_v2  ;;  %v1766_v8 = vld [vmem:[#allocation3 + $0x44] ss:$8 sps:$4 sm:$0xff]   ;;  %v1768_v9 = vld [vmem:[#allocation3 + $0x40] ss:$8 sps:$4 sm:$0xff]   ;;  %v1769_v10 = vld [vmem:[#allocation3 + $0x54] ss:$8 sps:$4 sm:$0xff]  }
  0x39   :  { %v1771_v11 = vld [vmem:[#allocation3 + $0x50] ss:$8 sps:$4 sm:$0xff]   ;;  %v1772_v12 = vld [vmem:[#allocation3 + $0x64] ss:$8 sps:$4 sm:$0xff]   ;;  %v1774_v14 = vld [vmem:[#allocation3 + $0x60] ss:$8 sps:$4 sm:$0xff]  }
  0x3a   :  { %v1804_v13 = vld [vmem:[%s2770_s0 + $0x4] ss:$8 sps:$4 sm:$0xff]   ;;  %v1775_v15 = vld [vmem:[#allocation3 + $0x74] ss:$8 sps:$4 sm:$0xff]   ;;  %v1777_v16 = vld [vmem:[#allocation3 + $0x70] ss:$8 sps:$4 sm:$0xff]  }
  0x3b   :  { %377 = vmatpush1.bf16.msra.mxu0 %v1759_v3  ;;  %406 = vmatprep.mubr.bf16.mxu0 %v1804_v13  ;;  %v1778_v17 = vld [vmem:[#allocation3 + $0x84] ss:$8 sps:$4 sm:$0xff]   ;;  %v1780_v18 = vld [vmem:[#allocation3 + $0x80] ss:$8 sps:$4 sm:$0xff]   ;;  %v1781_v19 = vld [vmem:[#allocation3 + $0x94] ss:$8 sps:$4 sm:$0xff]  }
  0x3c   :  { %378 = vmatprep.subr.bf16.mxu0 %v1760_v4  ;;  %v1826_v20 = vld [vmem:[#allocation5 + $0x4] ss:$8 sps:$4 sm:$0xff]   ;;  %v1828_v21 = vld [vmem:[#allocation5] ss:$8 sps:$4 sm:$0xff]   ;;  %v1783_v22 = vld [vmem:[#allocation3 + $0x90] ss:$8 sps:$4 sm:$0xff]  }
  0x3d   :  { %867 = vmatprep.subr.bf16.mxu1 %v1826_v20  ;;  %v1829_v23 = vld [vmem:[#allocation5 + $0x14] ss:$8 sps:$4 sm:$0xff]   ;;  %v1784_v24 = vld [vmem:[#allocation3 + $0xa4] ss:$8 sps:$4 sm:$0xff]   ;;  %v1831_v25 = vld [vmem:[#allocation5 + $0x10] ss:$8 sps:$4 sm:$0xff]  }
  0x3e   :  { %868 = vmatpush1.bf16.msra.mxu1 %v1828_v21  ;;  %v1832_v26 = vld [vmem:[#allocation5 + $0x24] ss:$8 sps:$4 sm:$0xff]   ;;  %v1786_v27 = vld [vmem:[#allocation3 + $0xa0] ss:$8 sps:$4 sm:$0xff]   ;;  %v1787_v28 = vld [vmem:[#allocation3 + $0xb4] ss:$8 sps:$4 sm:$0xff]  }
  0x3f   :  { %379 = vmatpush1.bf16.msra.mxu0 %v1762_v5  ;;  %869 = vmatprep.subr.bf16.mxu1 %v1829_v23  ;;  %v1834_v29 = vld [vmem:[#allocation5 + $0x20] ss:$8 sps:$4 sm:$0xff]   ;;  %v1835_v30 = vld [vmem:[#allocation5 + $0x34] ss:$8 sps:$4 sm:$0xff]   ;;  %v1789_v31 = vld [vmem:[#allocation3 + $0xb0] ss:$8 sps:$4 sm:$0xff]  }
  0x40   :  { %380 = vmatprep.subr.bf16.mxu0 %v1763_v6  ;;  %v1790_v32 = vld [vmem:[#allocation3 + $0xc4] ss:$8 sps:$4 sm:$0xff]   ;;  %v1837_v33 = vld [vmem:[#allocation5 + $0x30] ss:$8 sps:$4 sm:$0xff]   ;;  %v1792_v35 = vld [vmem:[#allocation3 + $0xc0] ss:$8 sps:$4 sm:$0xff]  }
  0x41   :  { %v1838_v34 = vld [vmem:[#allocation5 + $0x44] ss:$8 sps:$4 sm:$0xff]   ;;  %v1840_v36 = vld [vmem:[#allocation5 + $0x40] ss:$8 sps:$4 sm:$0xff]   ;;  %v1793_v37 = vld [vmem:[#allocation3 + $0xd4] ss:$8 sps:$4 sm:$0xff]  }
  0x42   :  { %870 = vmatpush1.bf16.msra.mxu1 %v1831_v25  ;;  %v1841_v38 = vld [vmem:[#allocation5 + $0x54] ss:$8 sps:$4 sm:$0xff]   ;;  %v1795_v39 = vld [vmem:[#allocation3 + $0xd0] ss:$8 sps:$4 sm:$0xff]   ;;  %v1796_v41 = vld [vmem:[#allocation3 + $0xe4] ss:$8 sps:$4 sm:$0xff]  }
  0x43   :  { %381 = vmatpush1.bf16.msra.mxu0 %v1765_v7  ;;  %871 = vmatprep.subr.bf16.mxu1 %v1832_v26  ;;  %v1843_v40 = vld [vmem:[#allocation5 + $0x50] ss:$8 sps:$4 sm:$0xff]   ;;  %v1844_v42 = vld [vmem:[#allocation5 + $0x64] ss:$8 sps:$4 sm:$0xff]   ;;  %v1798_v43 = vld [vmem:[#allocation3 + $0xe0] ss:$8 sps:$4 sm:$0xff]  }
  0x44   :  { %382 = vmatprep.subr.bf16.mxu0 %v1766_v8  ;;  %v1846_v44 = vld [vmem:[#allocation5 + $0x60] ss:$8 sps:$4 sm:$0xff]   ;;  %v1799_v45 = vld [vmem:[#allocation3 + $0xf4] ss:$8 sps:$4 sm:$0xff]   ;;  %v1801_v47 = vld [vmem:[#allocation3 + $0xf0] ss:$8 sps:$4 sm:$0xff]  }
  0x45   :  { %v1847_v46 = vld [vmem:[#allocation5 + $0x74] ss:$8 sps:$4 sm:$0xff]   ;;  %v1849_v48 = vld [vmem:[#allocation5 + $0x70] ss:$8 sps:$4 sm:$0xff]   ;;  %v1850_v49 = vld [vmem:[#allocation5 + $0x84] ss:$8 sps:$4 sm:$0xff]  }
  0x46   :  { %872 = vmatpush1.bf16.msra.mxu1 %v1834_v29  ;;  %v1802_v50 = vld [vmem:[%s2770_s0] ss:$8 sps:$4 sm:$0xff]   ;;  %v1805_v51 = vld [vmem:[%s2770_s0 + $0x14] ss:$8 sps:$4 sm:$0xff]   ;;  %v1855_v54 = vld [vmem:[#allocation5 + $0x90] ss:$8 sps:$4 sm:$0xff]  }
  0x47   :  { %383 = vmatpush1.bf16.msra.mxu0 %v1768_v9  ;;  %873 = vmatprep.subr.bf16.mxu1 %v1835_v30  ;;  %v1852_v52 = vld [vmem:[#allocation5 + $0x80] ss:$8 sps:$4 sm:$0xff]   ;;  %v1853_v53 = vld [vmem:[#allocation5 + $0x94] ss:$8 sps:$4 sm:$0xff]   ;;  %v1807_v55 = vld [vmem:[%s2770_s0 + $0x10] ss:$8 sps:$4 sm:$0xff]  }
  0x48   :  { %384 = vmatprep.subr.bf16.mxu0 %v1769_v10  ;;  %v1808_v56 = vld [vmem:[%s2770_s0 + $0x24] ss:$8 sps:$4 sm:$0xff]   ;;  %v1810_v57 = vld [vmem:[%s2770_s0 + $0x20] ss:$8 sps:$4 sm:$0xff]   ;;  %v1811_v58 = vld [vmem:[%s2770_s0 + $0x34] ss:$8 sps:$4 sm:$0xff]  }
  0x49   :  { %v1813_v59 = vld [vmem:[%s2770_s0 + $0x30] ss:$8 sps:$4 sm:$0xff]   ;;  %v1814_v60 = vld [vmem:[%s2770_s0 + $0x44] ss:$8 sps:$4 sm:$0xff]   ;;  %v1816_v61 = vld [vmem:[%s2770_s0 + $0x40] ss:$8 sps:$4 sm:$0xff]  }
  0x4a   :  { %874 = vmatpush1.bf16.msra.mxu1 %v1837_v33  ;;  %v1817_v62 = vld [vmem:[%s2770_s0 + $0x54] ss:$8 sps:$4 sm:$0xff]   ;;  %v1819_v63 = vld [vmem:[%s2770_s0 + $0x50] ss:$8 sps:$4 sm:$0xff]   ;;  %v1820_v0 = vld [vmem:[%s2770_s0 + $0x64] ss:$8 sps:$4 sm:$0xff]   ;;  %v124_v33 = vlaneseq }
  0x4b   :  { %385 = vmatpush1.bf16.msra.mxu0 %v1771_v11  ;;  %875 = vmatprep.subr.bf16.mxu1 %v1838_v34  ;;  %v1822_v1 = vld [vmem:[%s2770_s0 + $0x60] ss:$8 sps:$4 sm:$0xff]   ;;  %v1823_v2 = vld [vmem:[%s2770_s0 + $0x74] ss:$8 sps:$4 sm:$0xff]   ;;  %v1825_v3 = vld [vmem:[%s2770_s0 + $0x70] ss:$8 sps:$4 sm:$0xff]  }
  0x4c   :  { %386 = vmatprep.subr.bf16.mxu0 %v1772_v12  ;;  %v1856_v4 = vld [vmem:[#allocation5 + $0xa4] ss:$8 sps:$4 sm:$0xff]   ;;  %v1858_v5 = vld [vmem:[#allocation5 + $0xa0] ss:$8 sps:$4 sm:$0xff]   ;;  %v1859_v6 = vld [vmem:[#allocation5 + $0xb4] ss:$8 sps:$4 sm:$0xff]  }
  0x4d   :  { %v1861_v7 = vld [vmem:[#allocation5 + $0xb0] ss:$8 sps:$4 sm:$0xff]   ;;  %v1862_v8 = vld [vmem:[#allocation5 + $0xc4] ss:$8 sps:$4 sm:$0xff]   ;;  %v1864_v9 = vld [vmem:[#allocation5 + $0xc0] ss:$8 sps:$4 sm:$0xff]  }
  0x4e   :  { %876 = vmatpush1.bf16.msra.mxu1 %v1840_v36  ;;  %v1865_v10 = vld [vmem:[#allocation5 + $0xd4] ss:$8 sps:$4 sm:$0xff]   ;;  %v1867_v11 = vld [vmem:[#allocation5 + $0xd0] ss:$8 sps:$4 sm:$0xff]   ;;  %v1868_v12 = vld [vmem:[#allocation5 + $0xe4] ss:$8 sps:$4 sm:$0xff]  }
  0x4f   :  { %387 = vmatpush1.bf16.msra.mxu0 %v1774_v14  ;;  %877 = vmatprep.subr.bf16.mxu1 %v1841_v38  ;;  %v1870_v13 = vld [vmem:[#allocation5 + $0xe0] ss:$8 sps:$4 sm:$0xff]   ;;  %v1871_v14 = vld [vmem:[#allocation5 + $0xf4] ss:$8 sps:$4 sm:$0xff]   ;;  %v2283_v20 = vld [vmem:[#allocation7 + $0x24] ss:$8 sps:$4 sm:$0xff]  }
  0x50   :  { %388 = vmatprep.subr.bf16.mxu0 %v1775_v15  ;;  %v1873_v15 = vld [vmem:[#allocation5 + $0xf0] ss:$8 sps:$4 sm:$0xff]   ;;  %v2286_v21 = vld [vmem:[#allocation7 + $0x20] ss:$8 sps:$4 sm:$0xff]   ;;  %v2301_v26 = vld [vmem:[#allocation7 + $0x54] ss:$8 sps:$4 sm:$0xff]  }
  0x51   :  { %v2292_v23 = vld [vmem:[#allocation7 + $0x30] ss:$8 sps:$4 sm:$0xff]   ;;  %v2298_v25 = vld [vmem:[#allocation7 + $0x40] ss:$8 sps:$4 sm:$0xff]   ;;  %v2313_v30 = vld [vmem:[#allocation7 + $0x74] ss:$8 sps:$4 sm:$0xff]  }
  0x52   :  { %878 = vmatpush1.bf16.msra.mxu1 %v1843_v40  ;;  %v2310_v29 = vld [vmem:[#allocation7 + $0x60] ss:$8 sps:$4 sm:$0xff]   ;;  %v125_v36 = vshrl.u32 %v124_v33, 7  ;;  %v2331_v38 = vld [vmem:[#allocation7 + $0xa4] ss:$8 sps:$4 sm:$0xff]  }
  0x53   :  { %389 = vmatpush1.bf16.msra.mxu0 %v1777_v16  ;;  %879 = vmatprep.subr.bf16.mxu1 %v1844_v42  ;;  %v2275_v16 = vld [vmem:[#allocation7] ss:$8 sps:$4 sm:$0xff]  }
  0x54   :  { %390 = vmatprep.subr.bf16.mxu0 %v1778_v17  ;;  %v1876_v17 = vld [vmem:[#allocation7 + $0x4] ss:$8 sps:$4 sm:$0xff]   ;;  %v2322_v34 = vld [vmem:[#allocation7 + $0x80] ss:$8 sps:$4 sm:$0xff]  }
  0x55   :  { %v122_v40 = vld [vmem:[%s2772_s2] sm:$0x3] }
  0x56   :  { %880 = vmatpush1.bf16.msra.mxu1 %v1846_v44  ;;  %v2341_v42 = vld [vmem:[#allocation7 + $0xa0] ss:$8 sps:$4 sm:$0xff]  }
  0x57   :  { %391 = vmatpush1.bf16.msra.mxu0 %v1780_v18  ;;  %881 = vmatprep.subr.bf16.mxu1 %v1847_v46  ;;  %v2277_v18 = vld [vmem:[#allocation7 + $0x14] ss:$8 sps:$4 sm:$0xff]   ;;  %v2353_v46 = vld [vmem:[#allocation7 + $0xb0] ss:$8 sps:$4 sm:$0xff]  }
  0x58   :  { %392 = vmatprep.subr.bf16.mxu0 %v1781_v19  ;;  %v2280_v19 = vld [vmem:[#allocation7 + $0x10] ss:$8 sps:$4 sm:$0xff]  }
  0x5a   :  { %882 = vmatpush1.bf16.msra.mxu1 %v1849_v48 }
  0x5b   :  { %393 = vmatpush1.bf16.msra.mxu0 %v1783_v22  ;;  %883 = vmatprep.subr.bf16.mxu1 %v1850_v49  ;;  %v2289_v22 = vld [vmem:[#allocation7 + $0x34] ss:$8 sps:$4 sm:$0xff]  }
  0x5c   :  { %394 = vmatprep.subr.bf16.mxu0 %v1784_v24  ;;  %v2295_v24 = vld [vmem:[#allocation7 + $0x44] ss:$8 sps:$4 sm:$0xff]  }
  0x5e   :  { %884 = vmatpush1.bf16.msra.mxu1 %v1852_v52 }
  0x5f   :  { %395 = vmatpush1.bf16.msra.mxu0 %v1786_v27  ;;  %885 = vmatprep.subr.bf16.mxu1 %v1853_v53  ;;  %v2304_v27 = vld [vmem:[#allocation7 + $0x50] ss:$8 sps:$4 sm:$0xff]   ;;  %v2361_v53 = vld [vmem:[#allocation7 + $0xc0] ss:$8 sps:$4 sm:$0xff]  }
  0x60   :  { %396 = vmatprep.subr.bf16.mxu0 %v1787_v28  ;;  %v2307_v28 = vld [vmem:[#allocation7 + $0x64] ss:$8 sps:$4 sm:$0xff]  }
  0x62   :  { %886 = vmatpush1.bf16.msra.mxu1 %v1855_v54 }
  0x63   :  { %397 = vmatpush1.bf16.msra.mxu0 %v1789_v31  ;;  %887 = vmatprep.subr.bf16.mxu1 %v1856_v4  ;;  %v2316_v31 = vld [vmem:[#allocation7 + $0x70] ss:$8 sps:$4 sm:$0xff]  }
  0x64   :  { %398 = vmatprep.subr.bf16.mxu0 %v1790_v32  ;;  %v2319_v32 = vld [vmem:[#allocation7 + $0x84] ss:$8 sps:$4 sm:$0xff]  }
  0x66   :  { %888 = vmatpush1.bf16.msra.mxu1 %v1858_v5 }
  0x67   :  { %399 = vmatpush1.bf16.msra.mxu0 %v1792_v35  ;;  %889 = vmatprep.subr.bf16.mxu1 %v1859_v6  ;;  %v2325_v35 = vld [vmem:[#allocation7 + $0x94] ss:$8 sps:$4 sm:$0xff]  }
  0x68   :  { %400 = vmatprep.subr.bf16.mxu0 %v1793_v37  ;;  %v2328_v37 = vld [vmem:[#allocation7 + $0x90] ss:$8 sps:$4 sm:$0xff]  }
  0x6a   :  { %890 = vmatpush1.bf16.msra.mxu1 %v1861_v7 }
  0x6b   :  { %401 = vmatpush1.bf16.msra.mxu0 %v1795_v39  ;;  %891 = vmatprep.subr.bf16.mxu1 %v1862_v8  ;;  %v2333_v39 = vsub.s32 0, %v125_v36 }
  0x6c   :  { %402 = vmatprep.subr.bf16.mxu0 %v1796_v41  ;;  %v2338_v41 = vsub.s32 1, %v125_v36 }
  0x6d   :  { %v2347_v44 = vrot.slane %v122_v40, %v2333_v39 }
  0x6e   :  { %892 = vmatpush1.bf16.msra.mxu1 %v1864_v9 }
  0x6f   :  { %403 = vmatpush1.bf16.msra.mxu0 %v1798_v43  ;;  %893 = vmatprep.subr.bf16.mxu1 %v1865_v10  ;;  %v2344_v43 = vld [vmem:[#allocation7 + $0xb4] ss:$8 sps:$4 sm:$0xff]  }
  0x70   :  { %404 = vmatprep.subr.bf16.mxu0 %v1799_v45  ;;  %v2350_v45 = vrot.slane %v122_v40, %v2338_v41 }
  0x72   :  { %894 = vmatpush1.bf16.msra.mxu1 %v1867_v11 }
  0x73   :  { %405 = vmatpush1.bf16.msra.mxu0 %v1801_v47  ;;  %895 = vmatprep.subr.bf16.mxu1 %v1868_v12  ;;  %v2356_v47 = vld [vmem:[#allocation7 + $0xc4] ss:$8 sps:$4 sm:$0xff]  }
  0x74   :  { %1200 = vmatprep.subr.bf16.mxu0 %v1876_v17 }
  0x76   :  { %407 = vmatmul.mubr.bf16.vlgmr.msra.gmra.mrb[0].mxu0 %v1802_v50  ;;  %896 = vmatpush1.bf16.msra.mxu1 %v1870_v13 }
  0x77   :  { %416 = vmatprep.mubr.bf16.mxu0 %v1805_v51  ;;  %897 = vmatprep.subr.bf16.mxu1 %v1871_v14 }
  0x78   :  { %1201 = vmatpush1.bf16.msra.mxu0 %v2275_v16 }
  0x79   :  { %1202 = vmatprep.subr.bf16.mxu0 %v2277_v18 }
  0x7a   :  { %898 = vmatpush1.bf16.msra.mxu1 %v1873_v15 }
  0x7b   :  { %1717 = vmatprep.subr.bf16.mxu1 %v1876_v17 }
  0x7c   :  { %1203 = vmatpush1.bf16.msra.mxu0 %v2280_v19 }
  0x7d   :  { %1204 = vmatprep.subr.bf16.mxu0 %v2283_v20 }
  0x7e   :  { %417 = vmatmul.mubr.bf16.gmra.mrb[4].mxu0 %v1807_v55 }
  0x7f   :  { %426 = vmatprep.mubr.bf16.mxu0 %v1808_v56 }
  0x80   :  { %1205 = vmatpush1.bf16.msra.mxu0 %v2286_v21 }
  0x81   :  { %1206 = vmatprep.subr.bf16.mxu0 %v2289_v22 }
  0x84   :  { %1207 = vmatpush1.bf16.msra.mxu0 %v2292_v23 }
  0x85   :  { %1208 = vmatprep.subr.bf16.mxu0 %v2295_v24 }
  0x86   :  { %427 = vmatmul.mubr.bf16.gmra.mrb[8].mxu0 %v1810_v57  ;;  %v2365_v57 = vld [vmem:[#allocation7 + $0xd4] ss:$8 sps:$4 sm:$0xff]  }
  0x87   :  { %436 = vmatprep.mubr.bf16.mxu0 %v1811_v58 }
  0x88   :  { %1209 = vmatpush1.bf16.msra.mxu0 %v2298_v25 }
  0x89   :  { %1210 = vmatprep.subr.bf16.mxu0 %v2301_v26 }
  0x8c   :  { %1211 = vmatpush1.bf16.msra.mxu0 %v2304_v27 }
  0x8d   :  { %1212 = vmatprep.subr.bf16.mxu0 %v2307_v28 }
  0x8e   :  { %437 = vmatmul.mubr.bf16.gmra.mrb[12].mxu0 %v1813_v59 }
  0x8f   :  { %446 = vmatprep.mubr.bf16.mxu0 %v1814_v60 }
  0x90   :  { %1213 = vmatpush1.bf16.msra.mxu0 %v2310_v29 }
  0x91   :  { %1214 = vmatprep.subr.bf16.mxu0 %v2313_v30 }
  0x94   :  { %1215 = vmatpush1.bf16.msra.mxu0 %v2316_v31 }
  0x95   :  { %1216 = vmatprep.subr.bf16.mxu0 %v2319_v32 }
  0x96   :  { %447 = vmatmul.mubr.bf16.gmra.mrb[16].mxu0 %v1816_v61 }
  0x97   :  { %456 = vmatprep.mubr.bf16.mxu0 %v1817_v62  ;;  %v2369_v62 = vld [vmem:[#allocation7 + $0xd0] ss:$8 sps:$4 sm:$0xff]  }
  0x98   :  { %1217 = vmatpush1.bf16.msra.mxu0 %v2322_v34 }
  0x99   :  { %1218 = vmatprep.subr.bf16.mxu0 %v2325_v35 }
  0x9c   :  { %1219 = vmatpush1.bf16.msra.mxu0 %v2328_v37 }
  0x9d   :  { %1220 = vmatprep.subr.bf16.mxu0 %v2331_v38 }
  0x9e   :  { %457 = vmatmul.mubr.bf16.gmra.mrb[20].mxu0 %v1819_v63 }
  0x9f   :  { %466 = vmatprep.mubr.bf16.mxu0 %v1820_v0 }
  0xa0   :  { %1221 = vmatpush1.bf16.msra.mxu0 %v2341_v42 }
  0xa1   :  { %1222 = vmatprep.subr.bf16.mxu0 %v2344_v43 }
  0xa4   :  { %1223 = vmatpush1.bf16.msra.mxu0 %v2353_v46 }
  0xa5   :  { %1224 = vmatprep.subr.bf16.mxu0 %v2356_v47 }
  0xa6   :  { %467 = vmatmul.mubr.bf16.gmra.mrb[24].mxu0 %v1822_v1 }
  0xa7   :  { %476 = vmatprep.mubr.bf16.mxu0 %v1823_v2 }
  0xa8   :  { %1225 = vmatpush1.bf16.msra.mxu0 %v2361_v53 }
  0xa9   :  { %1226 = vmatprep.subr.bf16.mxu0 %v2365_v57 }
  0xac   :  { %1227 = vmatpush1.bf16.msra.mxu0 %v2369_v62 }
  0xae   :  { %477 = vmatmul.mubr.bf16.gmra.mrb[28].mxu0 %v1825_v3 }
 0x149   :  { %v408_v48 = vpop.f32.mrb[0].mxu0 }
 0x14a   :  { %v409_v49 = vadd.f32 %v408_v48, %v2347_v44  ;;  %v410_v50 = vpop.f32.mrb[1].mxu0 }
 0x14b   :  { %v411_v51 = vadd.f32 %v410_v50, %v2350_v45  ;;  %v412_v52 = vpop.f32.mrb[2].mxu0 }
 0x14c   :  { %v519_v54 = vmul.f32 0.70710677, %v409_v49  ;;  %v413_v55 = vadd.f32 %v412_v52, %v2347_v44  ;;  %v414_v56 = vpop.f32.mrb[3].mxu0  ;;  %v487_v15 = vmul.f32 0.5, %v409_v49 }
 0x14d   :  { %v520_v58 = vmul.f32 0.70710677, %v411_v51  ;;  %v415_v59 = vadd.f32 %v414_v56, %v2350_v45 }
 0x14e   :  { %1922 = verf.f32 %v519_v54  ;;  %v521_v60 = vmul.f32 0.70710677, %v413_v55  ;;  %v489_v48 = vmul.f32 0.5, %v413_v55 }
 0x14f   :  { %1924 = verf.f32 %v520_v58  ;;  %v522_v61 = vmul.f32 0.70710677, %v415_v59  ;;  %v488_v58 = vmul.f32 0.5, %v411_v51 }
 0x150   :  { %1926 = verf.f32 %v521_v60 }
 0x151   :  { %1928 = verf.f32 %v522_v61  ;;  %v418_v63 = vpop.f32.mrb[4].mxu0 }
 0x152   :  { %v419_v0 = vadd.f32 %v418_v63, %v2347_v44  ;;  %v420_v1 = vpop.f32.mrb[5].mxu0 }
 0x153   :  { %v421_v2 = vadd.f32 %v420_v1, %v2350_v45  ;;  %v422_v3 = vpop.f32.mrb[6].mxu0 }
 0x154   :  { %v523_v4 = vmul.f32 0.70710677, %v419_v0  ;;  %v423_v5 = vadd.f32 %v422_v3, %v2347_v44  ;;  %v424_v6 = vpop.f32.mrb[7].mxu0  ;;  %v490_v3 = vmul.f32 0.5, %v415_v59 }
 0x155   :  { %v524_v7 = vmul.f32 0.70710677, %v421_v2  ;;  %v425_v8 = vadd.f32 %v424_v6, %v2350_v45 }
 0x156   :  { %1930 = verf.f32 %v523_v4  ;;  %v525_v9 = vmul.f32 0.70710677, %v423_v5 }
 0x157   :  { %1932 = verf.f32 %v524_v7  ;;  %v526_v10 = vmul.f32 0.70710677, %v425_v8 }
 0x158   :  { %v1923_v11 = vpop.eup %1922  ;;  %1934 = verf.f32 %v525_v9 }
 0x159   :  { %v1925_v12 = vpop.eup %1924  ;;  %1936 = verf.f32 %v526_v10  ;;  %v428_v13 = vpop.f32.mrb[8].mxu0  ;;  %v583_v17 = vadd.f32 1.0, %v1923_v11 }
 0x15a   :  { %v1927_v14 = vpop.eup %1926  ;;  %v2378_v33 = vadd.f32 %v428_v13, %v2347_v44  ;;  %v430_v36 = vpop.f32.mrb[9].mxu0  ;;  %v584_v56 = vadd.f32 1.0, %v1925_v12 }
 0x15b   :  { %v1929_v40 = vpop.eup %1928  ;;  %v585_v50 = vadd.f32 1.0, %v1927_v14  ;;  %v2381_v52 = vadd.f32 %v430_v36, %v2350_v45  ;;  %v432_v54 = vpop.f32.mrb[10].mxu0  ;;  %v615_v6 = vmul.f32 %v583_v17, %v487_v15 }
 0x15c   :  { %v527_v60 = vmul.f32 0.70710677, %v2378_v33  ;;  %v2385_v61 = vadd.f32 %v432_v54, %v2347_v44  ;;  %v434_v49 = vpop.f32.mrb[11].mxu0  ;;  %v586_v63 = vadd.f32 1.0, %v1929_v40  ;;  %v616_v9 = vmul.f32 %v584_v56, %v488_v58 }
 0x15d   :  { %v617_v1 = vmul.f32 %v585_v50, %v489_v48  ;;  %v528_v4 = vmul.f32 0.70710677, %v2381_v52  ;;  %v2389_v55 = vadd.f32 %v434_v49, %v2350_v45  ;;  %v491_v54 = vmul.f32 0.5, %v419_v0 }
 0x15e   :  { %1938 = verf.f32 %v527_v60  ;;  %v529_v7 = vmul.f32 0.70710677, %v2385_v61  ;;  %v618_v10 = vmul.f32 %v586_v63, %v490_v3  ;;  %v493_v60 = vmul.f32 0.5, %v423_v5 }
 0x15f   :  { %1940 = verf.f32 %v528_v4  ;;  %v530_v51 = vmul.f32 0.70710677, %v2389_v55  ;;  %v647_v12 = vpack.c.bf16 %v617_v1, %v615_v6  ;;  %v492_v63 = vmul.f32 0.5, %v421_v2 }
 0x160   :  { %v1931_v11 = vpop.eup %1930  ;;  %1942 = verf.f32 %v529_v7  ;;  %v648_v36 = vpack.c.bf16 %v618_v10, %v616_v9  ;;  %v494_v1 = vmul.f32 0.5, %v425_v8 }
 0x161   :  { %v1933_v13 = vpop.eup %1932  ;;  %v587_v14 = vadd.f32 1.0, %v1931_v11  ;;  %1944 = verf.f32 %v530_v51  ;;  %v438_v59 = vpop.f32.mrb[12].mxu0 }
 0x162   :  { %v1935_v40 = vpop.eup %1934  ;;  %v588_v48 = vadd.f32 1.0, %v1933_v13  ;;  %v2394_v15 = vadd.f32 %v438_v59, %v2347_v44  ;;  %v440_v17 = vpop.f32.mrb[13].mxu0  ;;  %899 = vmatprep.mubr.bf16.mxu1 %v648_v36 }
 0x163   :  { %v1937_v50 = vpop.eup %1936  ;;  %v589_v49 = vadd.f32 1.0, %v1935_v40  ;;  %v2397_v56 = vadd.f32 %v440_v17, %v2350_v45  ;;  %v442_v58 = vpop.f32.mrb[14].mxu0  ;;  %900 = vmatmul.mubr.bf16.vlgmr.msra.gmra.mrb[0].mxu1 %v647_v12  ;;  %v619_v7 = vmul.f32 %v587_v14, %v491_v54  ;;  %v495_v54 = vmul.f32 0.5, %v2378_v33 }
 0x164   :  { %v590_v3 = vadd.f32 1.0, %v1937_v50  ;;  %v531_v4 = vmul.f32 0.70710677, %v2394_v15  ;;  %v444_v6 = vpop.f32.mrb[15].mxu0  ;;  %v2402_v0 = vadd.f32 %v442_v58, %v2347_v44  ;;  %1733 = vmatpush1.bf16.msra.mxu1 %v2275_v16  ;;  %v620_v5 = vmul.f32 %v588_v48, %v492_v63 }
 0x165   :  { %v621_v51 = vmul.f32 %v589_v49, %v493_v60  ;;  %v532_v9 = vmul.f32 0.70710677, %v2397_v56  ;;  %v2406_v2 = vadd.f32 %v444_v6, %v2350_v45  ;;  %1718 = vmatprep.subr.bf16.mxu1 %v2277_v18  ;;  %v497_v60 = vmul.f32 0.5, %v2385_v61 }
 0x166   :  { %v622_v10 = vmul.f32 %v590_v3, %v494_v1  ;;  %1946 = verf.f32 %v531_v4  ;;  %v533_v8 = vmul.f32 0.70710677, %v2402_v0  ;;  %v496_v63 = vmul.f32 0.5, %v2381_v52 }
 0x167   :  { %1948 = verf.f32 %v532_v9  ;;  %v649_v11 = vpack.c.bf16 %v621_v51, %v619_v7  ;;  %v534_v13 = vmul.f32 0.70710677, %v2406_v2  ;;  %v498_v1 = vmul.f32 0.5, %v2389_v55 }
 0x168   :  { %v1939_v12 = vpop.eup %1938  ;;  %v650_v14 = vpack.c.bf16 %v622_v10, %v620_v5  ;;  %1950 = verf.f32 %v533_v8  ;;  %1734 = vmatpush1.bf16.msra.mxu1 %v2280_v19 }
 0x169   :  { %v1941_v59 = vpop.eup %1940  ;;  %v591_v36 = vadd.f32 1.0, %v1939_v12  ;;  %v448_v16 = vpop.f32.mrb[16].mxu0  ;;  %1952 = verf.f32 %v534_v13  ;;  %1719 = vmatprep.subr.bf16.mxu1 %v2283_v20 }
 0x16a   :  { %v1943_v40 = vpop.eup %1942  ;;  %v592_v48 = vadd.f32 1.0, %v1941_v59  ;;  %v2413_v17 = vadd.f32 %v448_v16, %v2347_v44  ;;  %v450_v18 = vpop.f32.mrb[17].mxu0  ;;  %909 = vmatprep.mubr.bf16.mxu1 %v650_v14 }
 0x16b   :  { %v1945_v50 = vpop.eup %1944  ;;  %v593_v49 = vadd.f32 1.0, %v1943_v40  ;;  %v2419_v58 = vadd.f32 %v450_v18, %v2350_v45  ;;  %v452_v19 = vpop.f32.mrb[18].mxu0  ;;  %910 = vmatmul.mubr.bf16.gmra.mrb[4].mxu1 %v649_v11  ;;  %v623_v20 = vmul.f32 %v591_v36, %v495_v54  ;;  %v499_v36 = vmul.f32 0.5, %v2394_v15 }
 0x16c   :  { %v594_v3 = vadd.f32 1.0, %v1945_v50  ;;  %v535_v4 = vmul.f32 0.70710677, %v2413_v17  ;;  %v454_v6 = vpop.f32.mrb[19].mxu0  ;;  %v2426_v61 = vadd.f32 %v452_v19, %v2347_v44  ;;  %1735 = vmatpush1.bf16.msra.mxu1 %v2286_v21  ;;  %v624_v51 = vmul.f32 %v592_v48, %v496_v63 }
 0x16d   :  { %v625_v7 = vmul.f32 %v593_v49, %v497_v60  ;;  %v536_v33 = vmul.f32 0.70710677, %v2419_v58  ;;  %v2430_v52 = vadd.f32 %v454_v6, %v2350_v45  ;;  %1720 = vmatprep.subr.bf16.mxu1 %v2289_v22  ;;  %v501_v50 = vmul.f32 0.5, %v2402_v0 }
 0x16e   :  { %v626_v9 = vmul.f32 %v594_v3, %v498_v1  ;;  %1954 = verf.f32 %v535_v4  ;;  %v537_v55 = vmul.f32 0.70710677, %v2426_v61 }
 0x16f   :  { %1956 = verf.f32 %v536_v33  ;;  %v651_v5 = vpack.c.bf16 %v625_v7, %v623_v20  ;;  %v538_v8 = vmul.f32 0.70710677, %v2430_v52 }
 0x170   :  { %v1947_v10 = vpop.eup %1946  ;;  %v652_v11 = vpack.c.bf16 %v626_v9, %v624_v51  ;;  %1958 = verf.f32 %v537_v55  ;;  %1736 = vmatpush1.bf16.msra.mxu1 %v2292_v23  ;;  %v500_v23 = vmul.f32 0.5, %v2397_v56 }
 0x171   :  { %v1949_v12 = vpop.eup %1948  ;;  %v458_v13 = vpop.f32.mrb[20].mxu0  ;;  %v595_v21 = vadd.f32 1.0, %v1947_v10  ;;  %1960 = verf.f32 %v538_v8  ;;  %1721 = vmatprep.subr.bf16.mxu1 %v2295_v24  ;;  %v502_v24 = vmul.f32 0.5, %v2406_v2  ;;  %v503_v10 = vmul.f32 0.5, %v2413_v17 }
 0x172   :  { %v2437_v14 = vadd.f32 %v458_v13, %v2347_v44  ;;  %v460_v59 = vpop.f32.mrb[21].mxu0  ;;  %919 = vmatprep.mubr.bf16.mxu1 %v652_v11  ;;  %v1951_v22 = vpop.eup %1950  ;;  %v596_v16 = vadd.f32 1.0, %v1949_v12 }
 0x173   :  { %v2442_v40 = vadd.f32 %v460_v59, %v2350_v45  ;;  %v462_v48 = vpop.f32.mrb[22].mxu0  ;;  %v1953_v18 = vpop.eup %1952  ;;  %v597_v54 = vadd.f32 1.0, %v1951_v22  ;;  %920 = vmatmul.mubr.bf16.gmra.mrb[8].mxu1 %v651_v5  ;;  %v627_v1 = vmul.f32 %v595_v21, %v499_v36  ;;  %v505_v21 = vmul.f32 0.5, %v2426_v61 }
 0x174   :  { %v539_v60 = vmul.f32 0.70710677, %v2437_v14  ;;  %v464_v49 = vpop.f32.mrb[23].mxu0  ;;  %v598_v19 = vadd.f32 1.0, %v1953_v18  ;;  %v2450_v63 = vadd.f32 %v462_v48, %v2347_v44  ;;  %1737 = vmatpush1.bf16.msra.mxu1 %v2298_v25  ;;  %v628_v0 = vmul.f32 %v596_v16, %v500_v23 }
 0x175   :  { %v540_v15 = vmul.f32 0.70710677, %v2442_v40  ;;  %v629_v3 = vmul.f32 %v597_v54, %v501_v50  ;;  %v2454_v56 = vadd.f32 %v464_v49, %v2350_v45  ;;  %1722 = vmatprep.subr.bf16.mxu1 %v2301_v26 }
 0x176   :  { %1962 = verf.f32 %v539_v60  ;;  %v630_v4 = vmul.f32 %v598_v19, %v502_v24  ;;  %v541_v2 = vmul.f32 0.70710677, %v2450_v63 }
 0x177   :  { %1964 = verf.f32 %v540_v15  ;;  %v542_v20 = vmul.f32 0.70710677, %v2454_v56  ;;  %v653_v7 = vpack.c.bf16 %v629_v3, %v627_v1 }
 0x178   :  { %v1955_v6 = vpop.eup %1954  ;;  %1966 = verf.f32 %v541_v2  ;;  %v654_v51 = vpack.c.bf16 %v630_v4, %v628_v0  ;;  %1738 = vmatpush1.bf16.msra.mxu1 %v2304_v27  ;;  %v504_v27 = vmul.f32 0.5, %v2419_v58  ;;  %v507_v0 = vmul.f32 0.5, %v2437_v14 }
 0x179   :  { %v1957_v33 = vpop.eup %1956  ;;  %v468_v25 = vpop.f32.mrb[24].mxu0  ;;  %v599_v9 = vadd.f32 1.0, %v1955_v6  ;;  %1968 = verf.f32 %v542_v20  ;;  %1723 = vmatprep.subr.bf16.mxu1 %v2307_v28  ;;  %v506_v28 = vmul.f32 0.5, %v2430_v52 }
 0x17a   :  { %v2461_v55 = vadd.f32 %v468_v25, %v2347_v44  ;;  %v470_v26 = vpop.f32.mrb[25].mxu0  ;;  %v1959_v5 = vpop.eup %1958  ;;  %v600_v8 = vadd.f32 1.0, %v1957_v33  ;;  %929 = vmatprep.mubr.bf16.mxu1 %v654_v51 }
 0x17b   :  { %v2466_v11 = vadd.f32 %v470_v26, %v2350_v45  ;;  %v472_v12 = vpop.f32.mrb[26].mxu0  ;;  %v1961_v13 = vpop.eup %1960  ;;  %v601_v59 = vadd.f32 1.0, %v1959_v5  ;;  %930 = vmatmul.mubr.bf16.gmra.mrb[12].mxu1 %v653_v7  ;;  %v631_v18 = vmul.f32 %v599_v9, %v503_v10  ;;  %v509_v7 = vmul.f32 0.5, %v2450_v63 }
 0x17c   :  { %v543_v22 = vmul.f32 0.70710677, %v2461_v55  ;;  %v474_v36 = vpop.f32.mrb[27].mxu0  ;;  %v602_v16 = vadd.f32 1.0, %v1961_v13  ;;  %v2474_v48 = vadd.f32 %v472_v12, %v2347_v44  ;;  %1739 = vmatpush1.bf16.msra.mxu1 %v2310_v29  ;;  %v632_v61 = vmul.f32 %v600_v8, %v504_v27 }
 0x17d   :  { %v544_v17 = vmul.f32 0.70710677, %v2466_v11  ;;  %v633_v23 = vmul.f32 %v601_v59, %v505_v21  ;;  %v2478_v58 = vadd.f32 %v474_v36, %v2350_v45  ;;  %1724 = vmatprep.subr.bf16.mxu1 %v2313_v30 }
 0x17e   :  { %1970 = verf.f32 %v543_v22  ;;  %v634_v50 = vmul.f32 %v602_v16, %v506_v28  ;;  %v545_v52 = vmul.f32 0.70710677, %v2474_v48  ;;  %v511_v22 = vmul.f32 0.5, %v2461_v55 }
 0x17f   :  { %1972 = verf.f32 %v544_v17  ;;  %v546_v60 = vmul.f32 0.70710677, %v2478_v58  ;;  %v655_v49 = vpack.c.bf16 %v633_v23, %v631_v18  ;;  %v513_v36 = vmul.f32 0.5, %v2474_v48 }
 0x180   :  { %v1963_v54 = vpop.eup %1962  ;;  %1974 = verf.f32 %v545_v52  ;;  %v656_v19 = vpack.c.bf16 %v634_v50, %v632_v61  ;;  %1740 = vmatpush1.bf16.msra.mxu1 %v2316_v31  ;;  %v508_v31 = vmul.f32 0.5, %v2442_v40  ;;  %v512_v16 = vmul.f32 0.5, %v2466_v11 }
 0x181   :  { %v1965_v24 = vpop.eup %1964  ;;  %v478_v29 = vpop.f32.mrb[28].mxu0  ;;  %v603_v15 = vadd.f32 1.0, %v1963_v54  ;;  %1976 = verf.f32 %v546_v60  ;;  %1725 = vmatprep.subr.bf16.mxu1 %v2319_v32  ;;  %v510_v32 = vmul.f32 0.5, %v2454_v56  ;;  %v514_v17 = vmul.f32 0.5, %v2478_v58 }
 0x182   :  { %v2485_v1 = vadd.f32 %v478_v29, %v2347_v44  ;;  %v480_v30 = vpop.f32.mrb[29].mxu0  ;;  %v1967_v3 = vpop.eup %1966  ;;  %v604_v4 = vadd.f32 1.0, %v1965_v24  ;;  %939 = vmatprep.mubr.bf16.mxu1 %v656_v19 }
 0x183   :  { %v2490_v2 = vadd.f32 %v480_v30, %v2350_v45  ;;  %v482_v6 = vpop.f32.mrb[30].mxu0  ;;  %v1969_v20 = vpop.eup %1968  ;;  %v605_v33 = vadd.f32 1.0, %v1967_v3  ;;  %940 = vmatmul.mubr.bf16.gmra.mrb[16].mxu1 %v655_v49  ;;  %v635_v5 = vmul.f32 %v603_v15, %v507_v0 }
 0x184   :  { %v547_v25 = vmul.f32 0.70710677, %v2485_v1  ;;  %v484_v51 = vpop.f32.mrb[31].mxu0  ;;  %v606_v9 = vadd.f32 1.0, %v1969_v20  ;;  %v483_v26 = vadd.f32 %v482_v6, %v2347_v44  ;;  %1741 = vmatpush1.bf16.msra.mxu1 %v2322_v34  ;;  %v636_v63 = vmul.f32 %v604_v4, %v508_v31  ;;  %v1916_v4 = vld [vmem:[#allocation7 + $0xe0] ss:$8 sps:$4 sm:$0xff]  }
 0x185   :  { %v548_v14 = vmul.f32 0.70710677, %v2490_v2  ;;  %v637_v10 = vmul.f32 %v605_v33, %v509_v7  ;;  %v485_v40 = vadd.f32 %v484_v51, %v2350_v45  ;;  %1726 = vmatprep.subr.bf16.mxu1 %v2325_v35 }
 0x186   :  { %1978 = verf.f32 %v547_v25  ;;  %v638_v8 = vmul.f32 %v606_v9, %v510_v32  ;;  %v549_v12 = vmul.f32 0.70710677, %v483_v26  ;;  %v517_v49 = vmul.f32 0.5, %v483_v26 }
 0x187   :  { %1980 = verf.f32 %v548_v14  ;;  %v550_v56 = vmul.f32 0.70710677, %v485_v40  ;;  %v657_v27 = vpack.c.bf16 %v637_v10, %v635_v5  ;;  %v518_v29 = vmul.f32 0.5, %v485_v40 }
 0x188   :  { %v1971_v13 = vpop.eup %1970  ;;  %1982 = verf.f32 %v549_v12  ;;  %v658_v59 = vpack.c.bf16 %v638_v8, %v636_v63  ;;  %1742 = vmatpush1.bf16.msra.mxu1 %v2328_v37 }
 0x189   :  { %v1973_v21 = vpop.eup %1972  ;;  %v607_v34 = vadd.f32 1.0, %v1971_v13  ;;  %1984 = verf.f32 %v550_v56  ;;  %1727 = vmatprep.subr.bf16.mxu1 %v2331_v38 }
 0x18a   :  { %v1975_v44 = vpop.eup %1974  ;;  %v608_v45 = vadd.f32 1.0, %v1973_v21  ;;  %949 = vmatprep.mubr.bf16.mxu1 %v658_v59 }
 0x18b   :  { %v1977_v35 = vpop.eup %1976  ;;  %v609_v28 = vadd.f32 1.0, %v1975_v44  ;;  %950 = vmatmul.mubr.bf16.gmra.mrb[20].mxu1 %v657_v27  ;;  %v639_v37 = vmul.f32 %v607_v34, %v511_v22 }
 0x18c   :  { %v610_v18 = vadd.f32 1.0, %v1977_v35  ;;  %1743 = vmatpush1.bf16.msra.mxu1 %v2341_v42  ;;  %v640_v38 = vmul.f32 %v608_v45, %v512_v16  ;;  %v515_v42 = vmul.f32 0.5, %v2485_v1  ;;  %v1918_v1 = vld [vmem:[#allocation7 + $0xe4] ss:$8 sps:$4 sm:$0xff]  }
 0x18d   :  { %v641_v23 = vmul.f32 %v609_v28, %v513_v36  ;;  %1728 = vmatprep.subr.bf16.mxu1 %v2344_v43  ;;  %v516_v43 = vmul.f32 0.5, %v2490_v2  ;;  %1228 = vmatprep.subr.bf16.mxu0 %v1918_v1  ;;  %v1921_v2 = vld [vmem:[#allocation7 + $0xf4] ss:$8 sps:$4 sm:$0xff]  }
 0x18e   :  { %v642_v61 = vmul.f32 %v610_v18, %v514_v17  ;;  %1229 = vmatpush1.bf16.msra.mxu0 %v1916_v4 }
 0x18f   :  { %v659_v52 = vpack.c.bf16 %v641_v23, %v639_v37  ;;  %1230 = vmatprep.subr.bf16.mxu0 %v1921_v2 }
 0x190   :  { %v1979_v50 = vpop.eup %1978  ;;  %v660_v54 = vpack.c.bf16 %v642_v61, %v640_v38  ;;  %1744 = vmatpush1.bf16.msra.mxu1 %v2353_v46 }
 0x191   :  { %v1981_v55 = vpop.eup %1980  ;;  %v611_v48 = vadd.f32 1.0, %v1979_v50  ;;  %1729 = vmatprep.subr.bf16.mxu1 %v2356_v47 }
 0x192   :  { %v1983_v11 = vpop.eup %1982  ;;  %v612_v58 = vadd.f32 1.0, %v1981_v55  ;;  %959 = vmatprep.mubr.bf16.mxu1 %v660_v54 }
 0x193   :  { %v1985_v60 = vpop.eup %1984  ;;  %v613_v24 = vadd.f32 1.0, %v1983_v11  ;;  %960 = vmatmul.mubr.bf16.gmra.mrb[24].mxu1 %v659_v52  ;;  %v643_v15 = vmul.f32 %v611_v48, %v515_v42 }
 0x194   :  { %v614_v19 = vadd.f32 1.0, %v1985_v60  ;;  %1745 = vmatpush1.bf16.msra.mxu1 %v2361_v53  ;;  %v644_v47 = vmul.f32 %v612_v58, %v516_v43  ;;  %v1919_v53 = vld [vmem:[#allocation7 + $0xf0] ss:$8 sps:$4 sm:$0xff]  }
 0x195   :  { %v645_v46 = vmul.f32 %v613_v24, %v517_v49  ;;  %1730 = vmatprep.subr.bf16.mxu1 %v2365_v57  ;;  %1231 = vmatpush1.bf16.msra.mxu0 %v1919_v53  ;;  %v695_v57 = vld [vmem:[%s2774_s4] sm:$0x3] }
 0x196   :  { %v646_v30 = vmul.f32 %v614_v19, %v518_v29  ;;  %v2523_v20 = vrot.slane %v695_v57, %v2338_v41 }
 0x197   :  { %v661_v3 = vpack.c.bf16 %v645_v46, %v643_v15 }
 0x198   :  { %v662_v0 = vpack.c.bf16 %v646_v30, %v644_v47  ;;  %1746 = vmatpush1.bf16.msra.mxu1 %v2369_v62  ;;  %v2520_v62 = vrot.slane %v695_v57, %v2333_v39 }
 0x199   :  { %1731 = vmatprep.subr.bf16.mxu1 %v1918_v1 }
 0x19a   :  { %969 = vmatprep.mubr.bf16.mxu1 %v662_v0 }
 0x19b   :  { %970 = vmatmul.mubr.bf16.gmra.mrb[28].mxu1 %v661_v3 }
 0x19c   :  { %1747 = vmatpush1.bf16.msra.mxu1 %v1916_v4 }
 0x19d   :  { %1732 = vmatprep.subr.bf16.mxu1 %v1921_v2 }
 0x1a0   :  { %1748 = vmatpush1.bf16.msra.mxu1 %v1919_v53 }
 0x236   :  { %v901_v6 = vpop.f32.mrb[0].mxu1 }
 0x237   :  { %v903_v31 = vpop.f32.mrb[1].mxu1  ;;  %v902_v33 = vadd.f32 %v901_v6, %v2520_v62 }
 0x238   :  { %v905_v7 = vpop.f32.mrb[2].mxu1  ;;  %v904_v32 = vadd.f32 %v903_v31, %v2523_v20 }
 0x239   :  { %v906_v25 = vadd.f32 %v905_v7, %v2520_v62  ;;  %v907_v51 = vpop.f32.mrb[3].mxu1 }
 0x23a   :  { %v908_v9 = vadd.f32 %v907_v51, %v2523_v20 }
 0x23b   :  { %v980_v14 = vpack.c.bf16 %v906_v25, %v902_v33 }
 0x23c   :  { %v981_v26 = vpack.c.bf16 %v908_v9, %v904_v32 }
 0x23e   :  { %v911_v5 = vpop.f32.mrb[4].mxu1  ;;  %1232 = vmatprep.mubr.bf16.mxu0 %v981_v26 }
 0x23f   :  { %v913_v10 = vpop.f32.mrb[5].mxu1  ;;  %1233 = vmatmul.mubr.bf16.vlgmr.msra.gmra.mrb[32].mxu0 %v980_v14  ;;  %v912_v63 = vadd.f32 %v911_v5, %v2520_v62 }
 0x240   :  { %v915_v40 = vpop.f32.mrb[6].mxu1  ;;  %v914_v13 = vadd.f32 %v913_v10, %v2523_v20 }
 0x241   :  { %v916_v8 = vadd.f32 %v915_v40, %v2520_v62  ;;  %v917_v12 = vpop.f32.mrb[7].mxu1 }
 0x242   :  { %v918_v56 = vadd.f32 %v917_v12, %v2523_v20 }
 0x243   :  { %v982_v27 = vpack.c.bf16 %v916_v8, %v912_v63 }
 0x244   :  { %v983_v21 = vpack.c.bf16 %v918_v56, %v914_v13 }
 0x246   :  { %v921_v59 = vpop.f32.mrb[8].mxu1  ;;  %1242 = vmatprep.mubr.bf16.mxu0 %v983_v21 }
 0x247   :  { %v923_v34 = vpop.f32.mrb[9].mxu1  ;;  %1243 = vmatmul.mubr.bf16.gmra.mrb[36].mxu0 %v982_v27  ;;  %v922_v45 = vadd.f32 %v921_v59, %v2520_v62  ;;  %v1028_v59 = vld [vmem:[%s2776_s6] sm:$0x3] }
 0x248   :  { %v925_v44 = vpop.f32.mrb[10].mxu1  ;;  %v924_v36 = vadd.f32 %v923_v34, %v2523_v20  ;;  %v2561_v34 = vrot.slane %v1028_v59, %v2333_v39 }
 0x249   :  { %v926_v35 = vadd.f32 %v925_v44, %v2520_v62  ;;  %v927_v22 = vpop.f32.mrb[11].mxu1  ;;  %v2564_v44 = vrot.slane %v1028_v59, %v2338_v41 }
 0x24a   :  { %v928_v28 = vadd.f32 %v927_v22, %v2523_v20 }
 0x24b   :  { %v984_v16 = vpack.c.bf16 %v926_v35, %v922_v45 }
 0x24c   :  { %v985_v17 = vpack.c.bf16 %v928_v28, %v924_v36 }
 0x24e   :  { %v931_v18 = vpop.f32.mrb[12].mxu1  ;;  %1252 = vmatprep.mubr.bf16.mxu0 %v985_v17 }
 0x24f   :  { %v933_v37 = vpop.f32.mrb[13].mxu1  ;;  %1253 = vmatmul.mubr.bf16.gmra.mrb[40].mxu0 %v984_v16  ;;  %v932_v38 = vadd.f32 %v931_v18, %v2520_v62 }
 0x250   :  { %v935_v23 = vpop.f32.mrb[14].mxu1  ;;  %v934_v52 = vadd.f32 %v933_v37, %v2523_v20 }
 0x251   :  { %v936_v61 = vadd.f32 %v935_v23, %v2520_v62  ;;  %v937_v50 = vpop.f32.mrb[15].mxu1 }
 0x252   :  { %v938_v55 = vadd.f32 %v937_v50, %v2523_v20 }
 0x253   :  { %v986_v54 = vpack.c.bf16 %v936_v61, %v932_v38 }
 0x254   :  { %v987_v48 = vpack.c.bf16 %v938_v55, %v934_v52 }
 0x256   :  { %v941_v11 = vpop.f32.mrb[16].mxu1  ;;  %1262 = vmatprep.mubr.bf16.mxu0 %v987_v48 }
 0x257   :  { %v943_v58 = vpop.f32.mrb[17].mxu1  ;;  %1263 = vmatmul.mubr.bf16.gmra.mrb[44].mxu0 %v986_v54  ;;  %v942_v42 = vadd.f32 %v941_v11, %v2520_v62 }
 0x258   :  { %v945_v60 = vpop.f32.mrb[18].mxu1  ;;  %v944_v43 = vadd.f32 %v943_v58, %v2523_v20 }
 0x259   :  { %v946_v49 = vadd.f32 %v945_v60, %v2520_v62  ;;  %v947_v24 = vpop.f32.mrb[19].mxu1 }
 0x25a   :  { %v948_v29 = vadd.f32 %v947_v24, %v2523_v20 }
 0x25b   :  { %v988_v19 = vpack.c.bf16 %v946_v49, %v942_v42  ;;  %v1473_v49 = vld [vmem:[%s2777_s7] sm:$0x3] }
 0x25c   :  { %v989_v15 = vpack.c.bf16 %v948_v29, %v944_v43 }
 0x25e   :  { %v951_v46 = vpop.f32.mrb[20].mxu1  ;;  %1272 = vmatprep.mubr.bf16.mxu1 %v989_v15 }
 0x25f   :  { %v953_v47 = vpop.f32.mrb[21].mxu1  ;;  %1273 = vmatmul.mubr.bf16.vlgmr.msra.gmra.mrb[32].mxu1 %v988_v19  ;;  %v952_v3 = vadd.f32 %v951_v46, %v2520_v62  ;;  %v2581_v46 = vrot.slane %v1473_v49, %v2333_v39 }
 0x260   :  { %v955_v30 = vpop.f32.mrb[22].mxu1  ;;  %v954_v4 = vadd.f32 %v953_v47, %v2523_v20 }
 0x261   :  { %v956_v0 = vadd.f32 %v955_v30, %v2520_v62  ;;  %v957_v1 = vpop.f32.mrb[23].mxu1 }
 0x262   :  { %v958_v2 = vadd.f32 %v957_v1, %v2523_v20 }
 0x263   :  { %v990_v53 = vpack.c.bf16 %v956_v0, %v952_v3 }
 0x264   :  { %v991_v57 = vpack.c.bf16 %v958_v2, %v954_v4  ;;  %v2585_v4 = vrot.slane %v1473_v49, %v2338_v41 }
 0x266   :  { %v961_v6 = vpop.f32.mrb[24].mxu1  ;;  %1282 = vmatprep.mubr.bf16.mxu1 %v991_v57 }
 0x267   :  { %v963_v31 = vpop.f32.mrb[25].mxu1  ;;  %1283 = vmatmul.mubr.bf16.gmra.mrb[36].mxu1 %v990_v53  ;;  %v962_v33 = vadd.f32 %v961_v6, %v2520_v62 }
 0x268   :  { %v965_v7 = vpop.f32.mrb[26].mxu1  ;;  %v964_v32 = vadd.f32 %v963_v31, %v2523_v20 }
 0x269   :  { %v966_v25 = vadd.f32 %v965_v7, %v2520_v62  ;;  %v967_v51 = vpop.f32.mrb[27].mxu1 }
 0x26a   :  { %v968_v9 = vadd.f32 %v967_v51, %v2523_v20 }
 0x26b   :  { %v992_v14 = vpack.c.bf16 %v966_v25, %v962_v33 }
 0x26c   :  { %v993_v26 = vpack.c.bf16 %v968_v9, %v964_v32 }
 0x26e   :  { %v971_v5 = vpop.f32.mrb[28].mxu1  ;;  %1292 = vmatprep.mubr.bf16.mxu1 %v993_v26 }
 0x26f   :  { %v973_v10 = vpop.f32.mrb[29].mxu1  ;;  %1293 = vmatmul.mubr.bf16.gmra.mrb[40].mxu1 %v992_v14  ;;  %v972_v63 = vadd.f32 %v971_v5, %v2520_v62 }
 0x270   :  { %v975_v40 = vpop.f32.mrb[30].mxu1  ;;  %v974_v13 = vadd.f32 %v973_v10, %v2523_v20 }
 0x271   :  { %v976_v8 = vadd.f32 %v975_v40, %v2520_v62  ;;  %v977_v12 = vpop.f32.mrb[31].mxu1 }
 0x272   :  { %v978_v56 = vadd.f32 %v977_v12, %v2523_v20 }
 0x273   :  { %v994_v27 = vpack.c.bf16 %v976_v8, %v972_v63 }
 0x274   :  { %v995_v21 = vpack.c.bf16 %v978_v56, %v974_v13 }
 0x276   :  { %1302 = vmatprep.mubr.bf16.mxu1 %v995_v21 }
 0x277   :  { %1303 = vmatmul.mubr.bf16.gmra.mrb[44].mxu1 %v994_v27 }
 0x312   :  { %v1234_v62 = vpop.f32.mrb[32].mxu0 }
 0x313   :  { %v1235_v45 = vadd.f32 %v1234_v62, %v2561_v34  ;;  %v1236_v35 = vpop.f32.mrb[33].mxu0 }
 0x314   :  { %v1237_v20 = vadd.f32 %v1236_v35, %v2564_v44  ;;  %v1238_v22 = vpop.f32.mrb[34].mxu0 }
 0x315   :  { %v1345_v36 = vmul.f32 0.70710677, %v1235_v45  ;;  %v1239_v28 = vadd.f32 %v1238_v22, %v2561_v34  ;;  %v1240_v16 = vpop.f32.mrb[35].mxu0  ;;  %v1313_v30 = vmul.f32 0.5, %v1235_v45 }
 0x316   :  { %v1346_v17 = vmul.f32 0.70710677, %v1237_v20  ;;  %v1241_v18 = vadd.f32 %v1240_v16, %v2564_v44  ;;  %v1314_v9 = vmul.f32 0.5, %v1237_v20 }
 0x317   :  { %1986 = verf.f32 %v1345_v36  ;;  %v1347_v37 = vmul.f32 0.70710677, %v1239_v28  ;;  %v1315_v3 = vmul.f32 0.5, %v1239_v28 }
 0x318   :  { %1988 = verf.f32 %v1346_v17  ;;  %v1348_v23 = vmul.f32 0.70710677, %v1241_v18  ;;  %v1316_v6 = vmul.f32 0.5, %v1241_v18 }
 0x319   :  { %1990 = verf.f32 %v1347_v37 }
 0x31a   :  { %1992 = verf.f32 %v1348_v23  ;;  %v1244_v38 = vpop.f32.mrb[36].mxu0 }
 0x31b   :  { %v1245_v61 = vadd.f32 %v1244_v38, %v2561_v34  ;;  %v1246_v50 = vpop.f32.mrb[37].mxu0 }
 0x31c   :  { %v2572_v52 = vadd.f32 %v1246_v50, %v2564_v44  ;;  %v1248_v55 = vpop.f32.mrb[38].mxu0 }
 0x31d   :  { %v1349_v54 = vmul.f32 0.70710677, %v1245_v61  ;;  %v1249_v48 = vadd.f32 %v1248_v55, %v2561_v34  ;;  %v1250_v11 = vpop.f32.mrb[39].mxu0  ;;  %v1317_v21 = vmul.f32 0.5, %v1245_v61 }
 0x31e   :  { %v1350_v58 = vmul.f32 0.70710677, %v2572_v52  ;;  %v1251_v60 = vadd.f32 %v1250_v11, %v2564_v44 }
 0x31f   :  { %1994 = verf.f32 %v1349_v54  ;;  %v1351_v42 = vmul.f32 0.70710677, %v1249_v48  ;;  %v1319_v20 = vmul.f32 0.5, %v1249_v48 }
 0x320   :  { %1996 = verf.f32 %v1350_v58  ;;  %v1352_v24 = vmul.f32 0.70710677, %v1251_v60  ;;  %v1320_v22 = vmul.f32 0.5, %v1251_v60  ;;  %v1318_v58 = vmul.f32 0.5, %v2572_v52 }
 0x321   :  { %v1987_v43 = vpop.eup %1986  ;;  %1998 = verf.f32 %v1351_v42 }
 0x322   :  { %v1989_v29 = vpop.eup %1988  ;;  %v1409_v19 = vadd.f32 1.0, %v1987_v43  ;;  %2000 = verf.f32 %v1352_v24  ;;  %v1254_v15 = vpop.f32.mrb[40].mxu0 }
 0x323   :  { %v1991_v47 = vpop.eup %1990  ;;  %v1255_v0 = vadd.f32 %v1254_v15, %v2561_v34  ;;  %v1256_v1 = vpop.f32.mrb[41].mxu0  ;;  %v1410_v53 = vadd.f32 1.0, %v1989_v29 }
 0x324   :  { %v1993_v2 = vpop.eup %1992  ;;  %v1411_v57 = vadd.f32 1.0, %v1991_v47  ;;  %v2588_v31 = vadd.f32 %v1256_v1, %v2564_v44  ;;  %v1258_v7 = vpop.f32.mrb[42].mxu0  ;;  %v1441_v32 = vmul.f32 %v1409_v19, %v1313_v30 }
 0x325   :  { %v1412_v33 = vadd.f32 1.0, %v1993_v2  ;;  %v1353_v39 = vmul.f32 0.70710677, %v1255_v0  ;;  %v2591_v25 = vadd.f32 %v1258_v7, %v2561_v34  ;;  %v1260_v51 = vpop.f32.mrb[43].mxu0  ;;  %v1442_v63 = vmul.f32 %v1410_v53, %v1314_v9 }
 0x326   :  { %v1443_v14 = vmul.f32 %v1411_v57, %v1315_v3  ;;  %v1354_v41 = vmul.f32 0.70710677, %v2588_v31  ;;  %v2595_v26 = vadd.f32 %v1260_v51, %v2564_v44  ;;  %v1485_v12 = vmul.f32 %v2581_v46, %v1441_v32 }
 0x327   :  { %v1444_v5 = vmul.f32 %v1412_v33, %v1316_v6  ;;  %2002 = verf.f32 %v1353_v39  ;;  %v1355_v10 = vmul.f32 0.70710677, %v2591_v25  ;;  %v1486_v45 = vmul.f32 %v2585_v4, %v1442_v63 }
 0x328   :  { %2004 = verf.f32 %v1354_v41  ;;  %v1356_v40 = vmul.f32 0.70710677, %v2595_v26  ;;  %v1487_v13 = vmul.f32 %v2581_v46, %v1443_v14  ;;  %v1321_v29 = vmul.f32 0.5, %v1255_v0 }
 0x329   :  { %v1995_v8 = vpop.eup %1994  ;;  %2006 = verf.f32 %v1355_v10  ;;  %v1488_v56 = vmul.f32 %v2585_v4, %v1444_v5  ;;  %v1517_v38 = vadd.f32 %v1486_v45, %v1485_v12  ;;  %v1322_v53 = vmul.f32 0.5, %v2588_v31 }
 0x32a   :  { %v1997_v27 = vpop.eup %1996  ;;  %v1413_v59 = vadd.f32 1.0, %v1995_v8  ;;  %2008 = verf.f32 %v1356_v40  ;;  %v1264_v62 = vpop.f32.mrb[44].mxu0  ;;  %v1323_v33 = vmul.f32 0.5, %v2591_v25  ;;  %v1324_v63 = vmul.f32 0.5, %v2595_v26 }
 0x32b   :  { %v1999_v35 = vpop.eup %1998  ;;  %v2604_v36 = vadd.f32 %v1264_v62, %v2561_v34  ;;  %v1266_v28 = vpop.f32.mrb[45].mxu0  ;;  %v1520_v16 = vadd.f32 %v1488_v56, %v1487_v13  ;;  %v1414_v18 = vadd.f32 1.0, %v1997_v27  ;;  %1518 = vadd.xlane.f32.xlu0 %v1517_v38 }
 0x32c   :  { %v2001_v17 = vpop.eup %2000  ;;  %v1415_v37 = vadd.f32 1.0, %v1999_v35  ;;  %v2607_v23 = vadd.f32 %v1266_v28, %v2564_v44  ;;  %v1268_v61 = vpop.f32.mrb[46].mxu0  ;;  %v1445_v11 = vmul.f32 %v1413_v59, %v1317_v21 }
 0x32d   :  { %v1416_v50 = vadd.f32 1.0, %v2001_v17  ;;  %v1357_v55 = vmul.f32 0.70710677, %v2604_v36  ;;  %v2611_v54 = vadd.f32 %v1268_v61, %v2561_v34  ;;  %v1270_v48 = vpop.f32.mrb[47].mxu0  ;;  %v1446_v15 = vmul.f32 %v1414_v18, %v1318_v58 }
 0x32e   :  { %v1447_v60 = vmul.f32 %v1415_v37, %v1319_v20  ;;  %v1358_v42 = vmul.f32 0.70710677, %v2607_v23  ;;  %v2616_v49 = vadd.f32 %v1270_v48, %v2564_v44  ;;  %v1489_v52 = vmul.f32 %v2581_v46, %v1445_v11 }
 0x32f   :  { %v1448_v24 = vmul.f32 %v1416_v50, %v1320_v22  ;;  %2010 = verf.f32 %v1357_v55  ;;  %v1359_v43 = vmul.f32 0.70710677, %v2611_v54  ;;  %1521 = vadd.xlane.f32.xlu0 %v1520_v16  ;;  %v1490_v0 = vmul.f32 %v2585_v4, %v1446_v15 }
 0x330   :  { %2012 = verf.f32 %v1358_v42  ;;  %v1360_v19 = vmul.f32 0.70710677, %v2616_v49  ;;  %v1491_v30 = vmul.f32 %v2581_v46, %v1447_v60  ;;  %v1325_v20 = vmul.f32 0.5, %v2604_v36 }
 0x331   :  { %v2003_v47 = vpop.eup %2002  ;;  %2014 = verf.f32 %v1359_v43  ;;  %v1492_v3 = vmul.f32 %v2585_v4, %v1448_v24  ;;  %v1523_v31 = vadd.f32 %v1490_v0, %v1489_v52  ;;  %v1326_v37 = vmul.f32 0.5, %v2607_v23 }
 0x332   :  { %v2005_v1 = vpop.eup %2004  ;;  %v1417_v2 = vadd.f32 1.0, %v2003_v47  ;;  %2016 = verf.f32 %v1360_v19  ;;  %v1274_v57 = vpop.f32.mrb[32].mxu1  ;;  %v1327_v42 = vmul.f32 0.5, %v2611_v54  ;;  %v1328_v19 = vmul.f32 0.5, %v2616_v49 }
 0x333   :  { %v2007_v6 = vpop.eup %2006  ;;  %v1418_v7 = vadd.f32 1.0, %v2005_v1  ;;  %v2627_v39 = vadd.f32 %v1274_v57, %v2561_v34  ;;  %v1276_v51 = vpop.f32.mrb[33].mxu1  ;;  %v1526_v32 = vadd.f32 %v1492_v3, %v1491_v30  ;;  %1524 = vadd.xlane.f32.xlu1 %v1523_v31 }
 0x334   :  { %v2009_v9 = vpop.eup %2008  ;;  %v1449_v14 = vmul.f32 %v1417_v2, %v1321_v29  ;;  %v1419_v41 = vadd.f32 1.0, %v2007_v6  ;;  %v2630_v5 = vadd.f32 %v1276_v51, %v2564_v44  ;;  %v1278_v10 = vpop.f32.mrb[34].mxu1 }
 0x335   :  { %v1450_v40 = vmul.f32 %v1418_v7, %v1322_v53  ;;  %v1420_v8 = vadd.f32 1.0, %v2009_v9  ;;  %v1361_v12 = vmul.f32 0.70710677, %v2627_v39  ;;  %v1280_v25 = vpop.f32.mrb[35].mxu1  ;;  %v2636_v27 = vadd.f32 %v1278_v10, %v2561_v34 }
 0x336   :  { %v1451_v13 = vmul.f32 %v1419_v41, %v1323_v33  ;;  %v1362_v56 = vmul.f32 0.70710677, %v2630_v5  ;;  %v2639_v59 = vadd.f32 %v1280_v25, %v2564_v44  ;;  %v1493_v62 = vmul.f32 %v2581_v46, %v1449_v14 }
 0x337   :  { %v1452_v21 = vmul.f32 %v1420_v8, %v1324_v63  ;;  %2018 = verf.f32 %v1361_v12  ;;  %v1363_v26 = vmul.f32 0.70710677, %v2636_v27  ;;  %v1494_v45 = vmul.f32 %v2585_v4, %v1450_v40  ;;  %1527 = vadd.xlane.f32.xlu1 %v1526_v32 }
 0x338   :  { %2020 = verf.f32 %v1362_v56  ;;  %v1364_v22 = vmul.f32 0.70710677, %v2639_v59  ;;  %v1495_v28 = vmul.f32 %v2581_v46, %v1451_v13  ;;  %v1329_v6 = vmul.f32 0.5, %v2627_v39 }
 0x339   :  { %v2011_v35 = vpop.eup %2010  ;;  %v1496_v16 = vmul.f32 %v2585_v4, %v1452_v21  ;;  %2022 = verf.f32 %v1363_v26  ;;  %v1529_v61 = vadd.f32 %v1494_v45, %v1493_v62  ;;  %v1330_v14 = vmul.f32 0.5, %v2630_v5 }
 0x33a   :  { %v2013_v17 = vpop.eup %2012  ;;  %v1421_v18 = vadd.f32 1.0, %v2011_v35  ;;  %v1284_v38 = vpop.f32.mrb[36].mxu1  ;;  %2024 = verf.f32 %v1364_v22  ;;  %v1331_v5 = vmul.f32 0.5, %v2636_v27  ;;  %v1332_v35 = vmul.f32 0.5, %v2639_v59 }
 0x33b   :  { %v2015_v50 = vpop.eup %2014  ;;  %v1422_v55 = vadd.f32 1.0, %v2013_v17  ;;  %v2650_v48 = vadd.f32 %v1284_v38, %v2561_v34  ;;  %v1286_v36 = vpop.f32.mrb[37].mxu1  ;;  %v1532_v11 = vadd.f32 %v1496_v16, %v1495_v28  ;;  %1530 = vadd.xlane.f32.xlu0 %v1529_v61 }
 0x33c   :  { %v2017_v58 = vpop.eup %2016  ;;  %v1453_v60 = vmul.f32 %v1421_v18, %v1325_v20  ;;  %v1423_v24 = vadd.f32 1.0, %v2015_v50  ;;  %v2654_v43 = vadd.f32 %v1286_v36, %v2564_v44  ;;  %v1288_v23 = vpop.f32.mrb[38].mxu1 }
 0x33d   :  { %v1454_v29 = vmul.f32 %v1422_v55, %v1326_v37  ;;  %v1424_v15 = vadd.f32 1.0, %v2017_v58  ;;  %v1365_v47 = vmul.f32 0.70710677, %v2650_v48  ;;  %v1290_v52 = vpop.f32.mrb[39].mxu1  ;;  %v2660_v1 = vadd.f32 %v1288_v23, %v2561_v34  ;;  %1533 = vadd.xlane.f32.xlu1 %v1532_v11 }
 0x33e   :  { %v1455_v30 = vmul.f32 %v1423_v24, %v1327_v42  ;;  %v1366_v3 = vmul.f32 0.70710677, %v2654_v43  ;;  %v2663_v2 = vadd.f32 %v1290_v52, %v2564_v44  ;;  %v1497_v53 = vmul.f32 %v2581_v46, %v1453_v60 }
 0x33f   :  { %v1456_v54 = vmul.f32 %v1424_v15, %v1328_v19  ;;  %2026 = verf.f32 %v1365_v47  ;;  %v1367_v49 = vmul.f32 0.70710677, %v2660_v1  ;;  %v1498_v57 = vmul.f32 %v2585_v4, %v1454_v29 }
 0x340   :  { %2028 = verf.f32 %v1366_v3  ;;  %v1368_v7 = vmul.f32 0.70710677, %v2663_v2  ;;  %v1499_v33 = vmul.f32 %v2581_v46, %v1455_v30  ;;  %v1333_v59 = vmul.f32 0.5, %v2650_v48 }
 0x341   :  { %v2019_v0 = vpop.eup %2018  ;;  %v1500_v51 = vmul.f32 %v2585_v4, %v1456_v54  ;;  %2030 = verf.f32 %v1367_v49  ;;  %v1535_v31 = vadd.f32 %v1498_v57, %v1497_v53  ;;  %v1334_v58 = vmul.f32 0.5, %v2654_v43 }
 0x342   :  { %v2021_v32 = vpop.eup %2020  ;;  %v1425_v9 = vadd.f32 1.0, %v2019_v0  ;;  %v1294_v41 = vpop.f32.mrb[40].mxu1  ;;  %2032 = verf.f32 %v1368_v7  ;;  %v1335_v43 = vmul.f32 0.5, %v2660_v1  ;;  %v1336_v0 = vmul.f32 0.5, %v2663_v2 }
 0x343   :  { %v1426_v10 = vadd.f32 1.0, %v2021_v32  ;;  %v2674_v40 = vadd.f32 %v1294_v41, %v2561_v34  ;;  %v1296_v63 = vpop.f32.mrb[41].mxu1  ;;  %v1538_v39 = vadd.f32 %v1500_v51, %v1499_v33  ;;  %v2023_v8 = vpop.eup %2022  ;;  %1536 = vadd.xlane.f32.xlu0 %v1535_v31 }
 0x344   :  { %v1457_v12 = vmul.f32 %v1425_v9, %v1329_v6  ;;  %v2677_v25 = vadd.f32 %v1296_v63, %v2564_v44  ;;  %v1298_v13 = vpop.f32.mrb[42].mxu1  ;;  %v2025_v56 = vpop.eup %2024  ;;  %v1427_v62 = vadd.f32 1.0, %v2023_v8 }
 0x345   :  { %v1458_v21 = vmul.f32 %v1426_v10, %v1330_v14  ;;  %v1369_v26 = vmul.f32 0.70710677, %v2674_v40  ;;  %v1300_v45 = vpop.f32.mrb[43].mxu1  ;;  %1539 = vadd.xlane.f32.xlu1 %v1538_v39  ;;  %v1428_v20 = vadd.f32 1.0, %v2025_v56  ;;  %v2684_v28 = vadd.f32 %v1298_v13, %v2561_v34 }
 0x346   :  { %v1370_v22 = vmul.f32 0.70710677, %v2677_v25  ;;  %v1459_v16 = vmul.f32 %v1427_v62, %v1331_v5  ;;  %v2687_v17 = vadd.f32 %v1300_v45, %v2564_v44  ;;  %v1501_v27 = vmul.f32 %v2581_v46, %v1457_v12 }
 0x347   :  { %2034 = verf.f32 %v1369_v26  ;;  %v1460_v18 = vmul.f32 %v1428_v20, %v1332_v35  ;;  %v1371_v37 = vmul.f32 0.70710677, %v2684_v28  ;;  %v1502_v50 = vmul.f32 %v2585_v4, %v1458_v21 }
 0x348   :  { %2036 = verf.f32 %v1370_v22  ;;  %v1372_v61 = vmul.f32 0.70710677, %v2687_v17  ;;  %v1503_v55 = vmul.f32 %v2581_v46, %v1459_v16  ;;  %v1337_v39 = vmul.f32 0.5, %v2674_v40 }
 0x349   :  { %v2027_v38 = vpop.eup %2026  ;;  %2038 = verf.f32 %v1371_v37  ;;  %v1504_v42 = vmul.f32 %v2585_v4, %v1460_v18  ;;  %v1541_v48 = vadd.f32 %v1502_v50, %v1501_v27  ;;  %v1339_v45 = vmul.f32 0.5, %v2684_v28 }
 0x34a   :  { %v2029_v36 = vpop.eup %2028  ;;  %v1429_v11 = vadd.f32 1.0, %v2027_v38  ;;  %v1304_v60 = vpop.f32.mrb[44].mxu1  ;;  %2040 = verf.f32 %v1372_v61  ;;  %v1340_v40 = vmul.f32 0.5, %v2687_v17 }
 0x34b   :  { %v1430_v24 = vadd.f32 1.0, %v2029_v36  ;;  %v1305_v23 = vadd.f32 %v1304_v60, %v2561_v34  ;;  %v1306_v29 = vpop.f32.mrb[45].mxu1  ;;  %v2031_v19 = vpop.eup %2030  ;;  %v1544_v30 = vadd.f32 %v1504_v42, %v1503_v55  ;;  %1542 = vadd.xlane.f32.xlu0 %v1541_v48 }
 0x34c   :  { %v1461_v15 = vmul.f32 %v1429_v11, %v1333_v59  ;;  %v1307_v47 = vadd.f32 %v1306_v29, %v2564_v44  ;;  %v1308_v52 = vpop.f32.mrb[46].mxu1  ;;  %v2033_v3 = vpop.eup %2032  ;;  %v1431_v53 = vadd.f32 1.0, %v2031_v19 }
 0x34d   :  { %v1462_v54 = vmul.f32 %v1430_v24, %v1334_v58  ;;  %v1373_v49 = vmul.f32 0.70710677, %v1305_v23  ;;  %v1310_v57 = vpop.f32.mrb[47].mxu1  ;;  %v1432_v6 = vadd.f32 1.0, %v2033_v3  ;;  %v1309_v33 = vadd.f32 %v1308_v52, %v2561_v34  ;;  %1545 = vadd.xlane.f32.xlu1 %v1544_v30 }
 0x34e   :  { %v1374_v7 = vmul.f32 0.70710677, %v1307_v47  ;;  %v1463_v51 = vmul.f32 %v1431_v53, %v1335_v43  ;;  %v1311_v32 = vadd.f32 %v1310_v57, %v2564_v44  ;;  %v1505_v9 = vmul.f32 %v2581_v46, %v1461_v15 }
 0x34f   :  { %2042 = verf.f32 %v1373_v49  ;;  %v1464_v14 = vmul.f32 %v1432_v6, %v1336_v0  ;;  %v1375_v1 = vmul.f32 0.70710677, %v1309_v33  ;;  %v1506_v10 = vmul.f32 %v2585_v4, %v1462_v54 }
 0x350   :  { %2044 = verf.f32 %v1374_v7  ;;  %v1376_v31 = vmul.f32 0.70710677, %v1311_v32  ;;  %v1507_v2 = vmul.f32 %v2581_v46, %v1463_v51  ;;  %v1338_v44 = vmul.f32 0.5, %v2677_v25 }
 0x351   :  { %v2035_v41 = vpop.eup %2034  ;;  %2046 = verf.f32 %v1375_v1  ;;  %v1508_v8 = vmul.f32 %v2585_v4, %v1464_v14  ;;  %v1547_v13 = vadd.f32 %v1506_v10, %v1505_v9  ;;  %v1341_v61 = vmul.f32 0.5, %v1305_v23 }
 0x352   :  { %v2037_v63 = vpop.eup %2036  ;;  %v1433_v34 = vadd.f32 1.0, %v2035_v41  ;;  %2048 = verf.f32 %v1376_v31  ;;  %v1342_v55 = vmul.f32 0.5, %v1307_v47  ;;  %v1343_v24 = vmul.f32 0.5, %v1309_v33 }
 0x353   :  { %v1434_v12 = vadd.f32 1.0, %v2037_v63  ;;  %v2039_v56 = vpop.eup %2038  ;;  %v1550_v5 = vadd.f32 %v1508_v8, %v1507_v2  ;;  %1548 = vadd.xlane.f32.xlu0 %v1547_v13  ;;  %v1344_v48 = vmul.f32 0.5, %v1311_v32  ;;  %v1566_v53 = vstv %s2778_s8 }
 0x354   :  { %v1465_v21 = vmul.f32 %v1433_v34, %v1337_v39  ;;  %v2041_v62 = vpop.eup %2040  ;;  %v1435_v35 = vadd.f32 1.0, %v2039_v56 }
 0x355   :  { %v1466_v26 = vmul.f32 %v1434_v12, %v1338_v44  ;;  %v1436_v20 = vadd.f32 1.0, %v2041_v62  ;;  %1551 = vadd.xlane.f32.xlu1 %v1550_v5 }
 0x356   :  { %v1509_v22 = vmul.f32 %v2581_v46, %v1465_v21  ;;  %v1467_v16 = vmul.f32 %v1435_v35, %v1339_v45 }
 0x357   :  { %v1510_v25 = vmul.f32 %v2585_v4, %v1466_v26  ;;  %v1468_v27 = vmul.f32 %v1436_v20, %v1340_v40 }
 0x358   :  { %v1511_v38 = vmul.f32 %v2581_v46, %v1467_v16 }
 0x359   :  { %v2043_v18 = vpop.eup %2042  ;;  %v1553_v37 = vadd.f32 %v1510_v25, %v1509_v22  ;;  %v1512_v28 = vmul.f32 %v2585_v4, %v1468_v27 }
 0x35a   :  { %v2045_v59 = vpop.eup %2044  ;;  %v1437_v50 = vadd.f32 1.0, %v2043_v18 }
 0x35b   :  { %v1438_v36 = vadd.f32 1.0, %v2045_v59  ;;  %1554 = vadd.xlane.f32.xlu0 %v1553_v37  ;;  %v2047_v17 = vpop.eup %2046  ;;  %v1556_v58 = vadd.f32 %v1512_v28, %v1511_v38 }
 0x35c   :  { %v1469_v11 = vmul.f32 %v1437_v50, %v1341_v61  ;;  %v2049_v60 = vpop.eup %2048  ;;  %v1439_v29 = vadd.f32 1.0, %v2047_v17 }
 0x35d   :  { %v1470_v42 = vmul.f32 %v1438_v36, %v1342_v55  ;;  %v1440_v19 = vadd.f32 1.0, %v2049_v60  ;;  %1557 = vadd.xlane.f32.xlu1 %v1556_v58 }
 0x35e   :  { %v1513_v15 = vmul.f32 %v2581_v46, %v1469_v11  ;;  %v1471_v52 = vmul.f32 %v1439_v29, %v1343_v24 }
 0x35f   :  { %v1514_v23 = vmul.f32 %v2585_v4, %v1470_v42  ;;  %v1472_v30 = vmul.f32 %v1440_v19, %v1344_v48 }
 0x360   :  { %v1515_v47 = vmul.f32 %v2581_v46, %v1471_v52 }
 0x361   :  { %v1559_v3 = vadd.f32 %v1514_v23, %v1513_v15  ;;  %v1516_v54 = vmul.f32 %v2585_v4, %v1472_v30 }
 0x363   :  { %1560 = vadd.xlane.f32.xlu0 %v1559_v3  ;;  %v1562_v43 = vadd.f32 %v1516_v54, %v1515_v47 }
 0x365   :  { %1563 = vadd.xlane.f32.xlu1 %v1562_v43 }
 0x3b8   :  { %v1519_v49 = vpop.xlane.xlu0 %1518 }
 0x3b9   :  { %v1567_v57 = vadd.f32 %v1566_v53, %v1519_v49 }
 0x3bb   :  { %1583 = vst [vmem:[%s2779_s9] sm:$0xff] %v1567_v57 }
 0x3bc   :  { %v1522_v0 = vpop.xlane.xlu0 %1521 }
 0x3bd   :  { %v1568_v6 = vadd.f32 %v1566_v53, %v1522_v0 }
 0x3bf   :  { %1584 = vst [vmem:[%s2779_s9 + $0x8] sm:$0xff] %v1568_v6 }
 0x3c0   :  { %v1525_v46 = vpop.xlane.xlu1 %1524 }
 0x3c1   :  { %v1569_v4 = vadd.f32 %v1566_v53, %v1525_v46 }
 0x3c3   :  { %1585 = vst [vmem:[%s2779_s9 + $0x10] sm:$0xff] %v1569_v4 }
 0x3c4   :  { %v1528_v7 = vpop.xlane.xlu1 %1527 }
 0x3c5   :  { %v1570_v33 = vadd.f32 %v1566_v53, %v1528_v7 }
 0x3c7   :  { %1586 = vst [vmem:[%s2779_s9 + $0x18] sm:$0xff] %v1570_v33 }
 0x3c8   :  { %v1531_v51 = vpop.xlane.xlu0 %1530 }
 0x3c9   :  { %v1571_v32 = vadd.f32 %v1566_v53, %v1531_v51 }
 0x3ca   :  { %v1534_v9 = vpop.xlane.xlu1 %1533 }
 0x3cb   :  { %1587 = vst [vmem:[%s2779_s9 + $0x20] sm:$0xff] %v1571_v32  ;;  %v1572_v14 = vadd.f32 %v1566_v53, %v1534_v9 }
 0x3cd   :  { %1588 = vst [vmem:[%s2779_s9 + $0x28] sm:$0xff] %v1572_v14 }
 0x3d0   :  { %v1537_v1 = vpop.xlane.xlu0 %1536 }
 0x3d1   :  { %v1573_v41 = vadd.f32 %v1566_v53, %v1537_v1 }
 0x3d2   :  { %v1540_v31 = vpop.xlane.xlu1 %1539 }
 0x3d3   :  { %v1574_v10 = vadd.f32 %v1566_v53, %v1540_v31  ;;  %1589 = vst [vmem:[%s2779_s9 + $0x30] sm:$0xff] %v1573_v41 }
 0x3d5   :  { %1590 = vst [vmem:[%s2779_s9 + $0x38] sm:$0xff] %v1574_v10 }
 0x3d8   :  { %v1543_v2 = vpop.xlane.xlu0 %1542 }
 0x3d9   :  { %v1575_v63 = vadd.f32 %v1566_v53, %v1543_v2 }
 0x3da   :  { %v1546_v39 = vpop.xlane.xlu1 %1545 }
 0x3db   :  { %v1576_v34 = vadd.f32 %v1566_v53, %v1546_v39  ;;  %1591 = vst [vmem:[%s2779_s9 + $0x40] sm:$0xff] %v1575_v63 }
 0x3dd   :  { %1592 = vst [vmem:[%s2779_s9 + $0x48] sm:$0xff] %v1576_v34 }
 0x3e0   :  { %v1549_v8 = vpop.xlane.xlu0 %1548 }
 0x3e1   :  { %v1577_v44 = vadd.f32 %v1566_v53, %v1549_v8 }
 0x3e2   :  { %v1552_v12 = vpop.xlane.xlu1 %1551 }
 0x3e3   :  { %v1578_v13 = vadd.f32 %v1566_v53, %v1552_v12  ;;  %1593 = vst [vmem:[%s2779_s9 + $0x50] sm:$0xff] %v1577_v44 }
 0x3e5   :  { %1594 = vst [vmem:[%s2779_s9 + $0x58] sm:$0xff] %v1578_v13 }
 0x3e8   :  { %v1555_v56 = vpop.xlane.xlu0 %1554 }
 0x3e9   :  { %v1579_v21 = vadd.f32 %v1566_v53, %v1555_v56 }
 0x3ea   :  { %v1558_v5 = vpop.xlane.xlu1 %1557 }
 0x3eb   :  { %1595 = vst [vmem:[%s2779_s9 + $0x60] sm:$0xff] %v1579_v21  ;;  %v1580_v62 = vadd.f32 %v1566_v53, %v1558_v5 }
 0x3ed   :  { %1596 = vst [vmem:[%s2779_s9 + $0x68] sm:$0xff] %v1580_v62 }
 0x3f0   :  { %v1561_v26 = vpop.xlane.xlu0 %1560 }
 0x3f1   :  { %v1581_v45 = vadd.f32 %v1566_v53, %v1561_v26 }
 0x3f2   :  { %v1564_v35 = vpop.xlane.xlu1 %1563 }
 0x3f3   :  { %1597 = vst [vmem:[%s2779_s9 + $0x70] sm:$0xff] %v1581_v45  ;;  %v1582_v40 = vadd.f32 %v1566_v53, %v1564_v35 }
 0x3f5   :  { %1598 = vst [vmem:[%s2779_s9 + $0x78] sm:$0xff] %v1582_v40 }
 0x3f6   :  { %1603 = vsyncpa [#allocation4], 1 }
 0x3f7   :  { %1604 = vsyncpa [#allocation6], 1 }

</bundles_post_ra>
